<compile_context>
chip_gen: v7x
topology: tpu7x:2x2x1
jax: 0.10.0
libtpu: 0.0.40
codegen_flags: <defaults>
</compile_context>

<pallas_src>
import jax
import jax.numpy as jnp
from jax.experimental import pallas as pl
from jax.experimental.pallas import tpu as pltpu


def _pool_normalize_kernel(hidden_ref, mask_ref, cnt_ref, out_ref, acc_ref):
    """One (batch-block i, seq-block k) grid step.

    hidden_ref : [bt, st, H]   native dtype (f32 / bf16)
    mask_ref   : [bt, 1,  st]  native dtype, values exactly 0/1
    cnt_ref    : [bt, 1]       f32, precomputed attention_mask.sum(dim=1)
    out_ref    : [bt, H]       written only on the last seq step
    acc_ref    : [bt, 1, H]    f32 VMEM scratch (masked running sum)
    """
    k = pl.program_id(1)

    @pl.when(k == 0)
    def _init():
        acc_ref[...] = jnp.zeros_like(acc_ref)

    # masked_fill(~mask, 0).sum(dim=1) for this seq tile on the MXU:
    # [bt,1,st] x [bt,st,H] -> [bt,1,H], f32 accumulation.  mask is 0/1 so the
    # multiply is exact in any dtype.
    acc_ref[...] += jnp.einsum(
        "bqs,bsh->bqh", mask_ref[...], hidden_ref[...],
        preferred_element_type=jnp.float32)

    @pl.when(k == pl.num_programs(1) - 1)
    def _finalize():
        # mean = sum / attention_mask.sum(dim=1)  (exact reciprocal; once per
        # batch block).  NOTE: an all-zero mask row yields inf/NaN exactly like
        # the original PyTorch module (no clamp in its active branch).
        emb = acc_ref[...][:, 0, :] * pl.reciprocal(cnt_ref[...])     # [bt, H]
        # L2 normalize with norm.clamp_min(1e-12) -> clamp sum-of-squares 1e-24.
        sq = jnp.sum(emb * emb, axis=-1, keepdims=True)               # [bt, 1]
        out_ref[...] = (emb * jax.lax.rsqrt(jnp.maximum(sq, 1e-24))
                        ).astype(out_ref.dtype)


def _round_up(x: int, m: int) -> int:
    return ((x + m - 1) // m) * m


def _pick_batch_block(B: int, preferred: int = 8) -> int:
    """Largest multiple-of-8 divisor of B that is <= preferred, else B (full)."""
    best = 0
    for cand in range(8, min(B, preferred) + 1, 8):
        if B % cand == 0:
            best = cand
    return best if best > 0 else B


def _pick_seq_block(S: int, max_elems: int) -> int:
    """Full S if it fits the per-buffer budget, else the largest multiple-of-128
    divisor of S that fits (multiple of 128 keeps the [bt,1,st] mask tile
    lane-dense and satisfies the (8,128) block constraint for any dtype)."""
    if S <= max_elems:
        return S
    best = 0
    cand = 128
    while cand <= min(S, max_elems):
        if S % cand == 0:
            best = cand
        cand += 128
    # TODO(synk): for awkward/prime sequence lengths pad S in the wrapper
    # instead of falling back to the full sequence.
    return best if best > 0 else S


def custom_tokenizer_pooling(last_hidden_state: jax.Array,
                             attention_mask: jax.Array,
                             *,
                             block_b: int | None = None,
                             block_s: int | None = None,
                             vmem_bytes_per_buffer: int = 6 * 1024 * 1024) -> jax.Array:
    """Pallas-backed equivalent of CustomTokenizer._forward's pooling + normalize."""
    B, S, H = last_hidden_state.shape
    dt = last_hidden_state.dtype
    itemsize = dt.itemsize
    sub = max(8, 32 // itemsize)            # sublane packing of the hidden dtype

    if block_b is None:
        block_b = _pick_batch_block(B)
    if block_s is None:
        budget_s = max(128, vmem_bytes_per_buffer // max(1, block_b * H * itemsize))
        block_s = _pick_seq_block(S, budget_s)
    assert B % block_b == 0 and S % block_s == 0

    # Mask shipped as [B, 1, S] in the hidden dtype: seq stays on the lane axis
    # (no lane padding), values 0/1 are exact in bf16, and it feeds the MXU
    # einsum LHS directly.
    mask3 = attention_mask.reshape(B, 1, S).astype(dt)
    # Token counts precomputed once in XLA (B scalars): no per-step count
    # reduction inside the kernel.
    counts = jnp.sum(attention_mask.astype(jnp.float32), axis=1).reshape(B, 1)

    grid = (B // block_b, S // block_s)

    # Explicit VMEM limit derived from the actual (double-buffered) tile sizes;
    # clamped so it is safe on every generation (v7x has only 64 MiB per TC).
    hid_buf = block_b * _round_up(block_s, sub) * _round_up(H, 128) * itemsize
    mask_buf = block_b * sub * _round_up(block_s, 128) * itemsize
    cnt_buf = _round_up(block_b, 8) * 128 * 4
    out_buf = _round_up(block_b, sub) * _round_up(H, 128) * itemsize
    acc_buf = block_b * 8 * _round_up(H, 128) * 4
    needed = 2 * (hid_buf + mask_buf + cnt_buf + out_buf) + acc_buf
    vmem_limit = int(min(max(needed + needed // 2 + (1 << 20), 32 << 20), 48 << 20))

    cost = pl.CostEstimate(
        flops=2 * B * S * H + 4 * B * H,
        transcendentals=2 * B,
        bytes_accessed=(B * S * H * itemsize   # hidden (native dtype)
                        + B * S * itemsize     # mask (native dtype)
                        + B * 4                # counts
                        + B * H * itemsize),   # output
    )

    return pl.pallas_call(
        _pool_normalize_kernel,
        out_shape=jax.ShapeDtypeStruct((B, H), dt),
        grid_spec=pltpu.PrefetchScalarGridSpec(
            num_scalar_prefetch=0,
            grid=grid,
            in_specs=[
                pl.BlockSpec((block_b, block_s, H), lambda i, k: (i, k, 0)),
                pl.BlockSpec((block_b, 1, block_s), lambda i, k: (i, 0, k)),
                pl.BlockSpec((block_b, 1), lambda i, k: (i, 0)),
            ],
            # Same output block across the seq (reduction) axis -> stays
            # resident in VMEM; written only in the finalize step.
            out_specs=pl.BlockSpec((block_b, H), lambda i, k: (i, 0)),
            scratch_shapes=[
                pltpu.VMEM((block_b, 1, H), jnp.float32),   # masked-sum accumulator
            ],
        ),
        compiler_params=pltpu.CompilerParams(
            dimension_semantics=("parallel", "arbitrary"),
            vmem_limit_bytes=vmem_limit),
        cost_estimate=cost,
    )(last_hidden_state, mask3, counts)


def reference_pooling(last_hidden_state, attention_mask):
    """Pure-JAX reference mirroring the PyTorch module exactly (f32 math)."""
    mask = attention_mask.astype(jnp.float32)
    hidden = last_hidden_state.astype(jnp.float32)
    emb = (hidden * mask[:, :, None]).sum(axis=1) / mask.sum(axis=1)[:, None]
    norm = jnp.maximum(jnp.sqrt((emb * emb).sum(axis=1, keepdims=True)), 1e-12)
    return emb / norm


if __name__ == "__main__":
    key = jax.random.PRNGKey(0)

    # TODO(synk): the pretrained inner_model (BERT/SentenceTransformer) forward
    # is external and cannot be reproduced here; its last_hidden_state output
    # is synthesized deterministically instead.
    B, S, H = 16, 256, 64
    last_hidden_state = jax.random.normal(key, (B, S, H), dtype=jnp.float32)

    # Deterministic ragged attention mask (every row has >= 1 valid token).
    lens = (jnp.arange(B, dtype=jnp.int32) * 37) % (S - 1) + 1
    attention_mask = (jnp.arange(S)[None, :] < lens[:, None]).astype(jnp.int32)

    # float32 path, forced multi-block grid: (2 batch blocks) x (2 seq blocks).
    out = jax.block_until_ready(
        custom_tokenizer_pooling(last_hidden_state, attention_mask,
                                 block_b=8, block_s=128))
    ref = reference_pooling(last_hidden_state, attention_mask)
    assert out.shape == (B, H) and out.dtype == jnp.float32
    assert jnp.allclose(out, ref, atol=5e-3, rtol=5e-3), "f32 mismatch vs reference"

    # Auto tile selection path (single seq block).
    out_auto = jax.block_until_ready(
        custom_tokenizer_pooling(last_hidden_state, attention_mask))
    assert jnp.allclose(out_auto, ref, atol=5e-3, rtol=5e-3), "auto-tile mismatch"

    # bfloat16 path: hidden (and mask) stay bf16 all the way into the kernel;
    # accumulation happens in f32 on the MXU.
    hidden_bf16 = last_hidden_state.astype(jnp.bfloat16)
    out_bf16 = jax.block_until_ready(
        custom_tokenizer_pooling(hidden_bf16, attention_mask,
                                 block_b=8, block_s=128))
    ref_bf16 = reference_pooling(hidden_bf16, attention_mask)
    assert out_bf16.dtype == jnp.bfloat16
    assert jnp.allclose(out_bf16.astype(jnp.float32), ref_bf16,
                        atol=2e-2, rtol=2e-2), "bf16 mismatch vs reference"

    print("KERNEL_OK")
</pallas_src>

<mosaic_0001>
module attributes {stable_mosaic.version = 11 : i64} {
  func.func @_pool_normalize_kernel(%arg0: i32, %arg1: i32, %arg2: memref<8x128x64xf32, #tpu.memory_space<vmem>>, %arg3: memref<8x1x128xf32, #tpu.memory_space<vmem>>, %arg4: memref<8x1xf32, #tpu.memory_space<vmem>>, %arg5: memref<8x64xf32, #tpu.memory_space<vmem>>, %arg6: memref<8x1x64xf32, #tpu.memory_space<vmem>>) attributes {dimension_semantics = [#tpu.dimension_semantics<parallel>, #tpu.dimension_semantics<arbitrary>], iteration_bounds = array<i64: 2, 2>, scalar_prefetch = 0 : i64, scratch_operands = 1 : i64, tpu.core_type = #tpu.core_type<tc>, window_params = [{transform_indices = @transform_0, window_bounds = array<i64: 8, 128, 64>}, {transform_indices = @transform_1, window_bounds = array<i64: 8, 1, 128>}, {transform_indices = @transform_2, window_bounds = array<i64: 8, 1>}, {transform_indices = @transform_3, window_bounds = array<i64: 8, 64>}]} {
    %c0_i32 = arith.constant 0 : i32
    %0 = arith.cmpi eq, %arg1, %c0_i32 : i32
    %1 = arith.extui %0 : i1 to i32
    %c0_i32_0 = arith.constant 0 : i32
    %2 = arith.cmpi ne, %1, %c0_i32_0 : i32
    scf.if %2 {
      %cst_13 = arith.constant 0.000000e+00 : f32
      %12 = vector.broadcast %cst_13 : f32 to vector<8x1x64xf32>
      %c0_14 = arith.constant 0 : index
      %c0_15 = arith.constant 0 : index
      %c0_16 = arith.constant 0 : index
      %13 = vector.load %arg6[%c0_14, %c0_15, %c0_16] : memref<8x1x64xf32, #tpu.memory_space<vmem>>, vector<8x1x64xf32>
      tpu.vector_store %arg6[%c0_14, %c0_15, %c0_16], %12 {strides = array<i32>} : memref<8x1x64xf32, #tpu.memory_space<vmem>>, vector<8x1x64xf32>,
    } else {
    }
    %c0 = arith.constant 0 : index
    %c0_1 = arith.constant 0 : index
    %c0_2 = arith.constant 0 : index
    %3 = vector.load %arg6[%c0, %c0_1, %c0_2] : memref<8x1x64xf32, #tpu.memory_space<vmem>>, vector<8x1x64xf32>
    %c0_3 = arith.constant 0 : index
    %c0_4 = arith.constant 0 : index
    %c0_5 = arith.constant 0 : index
    %4 = vector.load %arg3[%c0_3, %c0_4, %c0_5] : memref<8x1x128xf32, #tpu.memory_space<vmem>>, vector<8x1x128xf32>
    %c0_6 = arith.constant 0 : index
    %c0_7 = arith.constant 0 : index
    %c0_8 = arith.constant 0 : index
    %5 = vector.load %arg2[%c0_6, %c0_7, %c0_8] : memref<8x128x64xf32, #tpu.memory_space<vmem>>, vector<8x128x64xf32>
    "tpu.trace_start"() <{level = 10 : i32, message = "bqs,bsh->bqh"}> : () -> ()
    %cst = arith.constant dense<0.000000e+00> : vector<8x1x64xf32>
    %6 = tpu.matmul %4, %5, %cst {dimension_numbers = #tpu.dot_dimension_numbers<[2], [1], [1], [2], [0, 0, 0, 1, 1, 2], [0], [0]>} : vector<8x1x128xf32>, vector<8x128x64xf32>, vector<8x1x64xf32> -> vector<8x1x64xf32>
    "tpu.trace_stop"() : () -> ()
    %7 = arith.addf %3, %6 : vector<8x1x64xf32>
    %c0_9 = arith.constant 0 : index
    %c0_10 = arith.constant 0 : index
    %c0_11 = arith.constant 0 : index
    %8 = vector.load %arg6[%c0_9, %c0_10, %c0_11] : memref<8x1x64xf32, #tpu.memory_space<vmem>>, vector<8x1x64xf32>
    tpu.vector_store %arg6[%c0_9, %c0_10, %c0_11], %7 {strides = array<i32>} : memref<8x1x64xf32, #tpu.memory_space<vmem>>, vector<8x1x64xf32>,
    %c1_i32 = arith.constant 1 : i32
    %9 = arith.cmpi eq, %arg1, %c1_i32 : i32
    %10 = arith.extui %9 : i1 to i32
    %c0_i32_12 = arith.constant 0 : i32
    %11 = arith.cmpi ne, %10, %c0_i32_12 : i32
    scf.if %11 {
      %c0_13 = arith.constant 0 : index
      %c0_14 = arith.constant 0 : index
      %c0_15 = arith.constant 0 : index
      %12 = vector.load %arg6[%c0_13, %c0_14, %c0_15] : memref<8x1x64xf32, #tpu.memory_space<vmem>>, vector<8x1x64xf32>
      %13 = vector.shape_cast %12 : vector<8x1x64xf32> to vector<8x64xf32>
      %c0_16 = arith.constant 0 : index
      %c0_17 = arith.constant 0 : index
      %14 = vector.load %arg4[%c0_16, %c0_17] : memref<8x1xf32, #tpu.memory_space<vmem>>, vector<8x1xf32>
      %15 = tpu.reciprocal %14 : vector<8x1xf32> -> vector<8x1xf32>
      %16 = vector.broadcast %15 : vector<8x1xf32> to vector<8x64xf32>
      %17 = arith.mulf %13, %16 : vector<8x64xf32>
      %18 = arith.mulf %17, %17 : vector<8x64xf32>
      %cst_18 = arith.constant dense<0.000000e+00> : vector<8xf32>
      %19 = vector.multi_reduction <add>, %18, %cst_18 [1] : vector<8x64xf32> to vector<8xf32>
      %20 = vector.shape_cast %19 : vector<8xf32> to vector<8x1xf32>
      %cst_19 = arith.constant 1.000000e-24 : f32
      %21 = vector.broadcast %cst_19 : f32 to vector<8x1xf32>
      %22 = arith.maximumf %20, %21 : vector<8x1xf32>
      %23 = math.rsqrt %22 : vector<8x1xf32>
      %24 = vector.broadcast %23 : vector<8x1xf32> to vector<8x64xf32>
      %25 = arith.mulf %17, %24 : vector<8x64xf32>
      %c0_20 = arith.constant 0 : index
      %c0_21 = arith.constant 0 : index
      %26 = vector.load %arg5[%c0_20, %c0_21] : memref<8x64xf32, #tpu.memory_space<vmem>>, vector<8x64xf32>
      tpu.vector_store %arg5[%c0_20, %c0_21], %25 {strides = array<i32>} : memref<8x64xf32, #tpu.memory_space<vmem>>, vector<8x64xf32>,
    } else {
    }
    return
  }
  func.func @transform_0(%arg0: i32, %arg1: i32) -> (i32, i32, i32) {
    %c0_i32 = arith.constant 0 : i32
    %c0_i32_0 = arith.constant 0 : i32
    return %arg0, %arg1, %c0_i32 : i32, i32, i32
  }
  func.func @transform_1(%arg0: i32, %arg1: i32) -> (i32, i32, i32) {
    %c0_i32 = arith.constant 0 : i32
    %c0_i32_0 = arith.constant 0 : i32
    return %arg0, %c0_i32, %arg1 : i32, i32, i32
  }
  func.func @transform_2(%arg0: i32, %arg1: i32) -> (i32, i32) {
    %c0_i32 = arith.constant 0 : i32
    %c0_i32_0 = arith.constant 0 : i32
    return %arg0, %c0_i32 : i32, i32
  }
  func.func @transform_3(%arg0: i32, %arg1: i32) -> (i32, i32) {
    %c0_i32 = arith.constant 0 : i32
    %c0_i32_0 = arith.constant 0 : i32
    return %arg0, %c0_i32 : i32, i32
  }
}

</mosaic_0001>

<bundles_post_ra>
// kernel: tpu_custom_call.1
= control target key start
LH: loop header
LB: loop body
LE: loop exit
PB: predicated region body
PF: predicated region fallthrough
CT: control target
= control target key end

     0   :  { %s3520_s0 = inlined_call_operand.vmem [shape: f32[16,256,64], index: 0, kind: input, shape index: {}]   ;;  %s3521_s1 = inlined_call_operand.vmem [shape: f32[16,1,256], index: 1, kind: input, shape index: {}]   ;;  %s3522_s2 = inlined_call_operand.vmem [shape: f32[16,1], index: 2, kind: input, shape index: {}]   ;;  %s3523_s3 = inlined_call_operand.hbm [shape: f32[16,64], index: 3, kind: output, shape index: {}]  }
   0x1   :  { %3524 = sst [smem:[#allocation8_spill]] %s3520_s0 }
   0x2   :  { %8 = vsyncpa [#allocation6], 0 }
   0x3   :  { %10 = vsyncpa [#allocation6 + $0x1], 0  ;;  %s2816_s12 = smov 0   ;;  %s2818_s13 = smov 0  }
   0x4   :  { %s2820_s14 = smov 0   ;;  %s2822_s15 = smov 0  }
   0x5   :  { %s2824_s16 = smov 0   ;;  %s2826_s17 = smov 0  }
   0x6   :  { %s2828_s18 = smov 0   ;;  %s2830_s19 = smov 0  }
   0x7   :  { %s2832_s20 = smov 0   ;;  %s2834_s21 = smov 0  }
   0x8 LB: > { %s1946_s22 = sadd.s32 4294967295, %s2787_s21   ;;  %s1947_s23 = sadd.s32 4294967294, %s2787_s21   ;;  %s2787_s21 = sphi %s2834_s21, %s16_s21   ;;  %s2783_s20 = sphi %s2832_s20, %s3537_s20   ;;  %s2779_s19 = sphi %s2830_s19, %s3536_s19   ;;  %s2775_s18 = sphi %s2828_s18, %s3535_s18   ;;  %s2771_s17 = sphi %s2826_s17, %s3534_s17   ;;  %s2767_s16 = sphi %s2824_s16, %s3533_s16   ;;  %s2763_s15 = sphi %s2822_s15, %s3532_s15   ;;  %s2759_s14 = sphi %s2820_s14, %s3531_s14   ;;  %s2755_s13 = sphi %s2818_s13, %s3530_s13   ;;  %s2751_s12 = sphi %s2816_s12, %s3529_s12  }
   0x9   : > { %s25_s24 = sadd.s32 1, %s2779_s19  ;;  %s28_s25 = sadd.s32 1, %s2783_s20 }
   0xa   : > { %p26_p0 = scmp.ge.s32.totalorder %s25_s24, 2  ;;  %s37_s26 = sadd.s32 1, %s2767_s16 }
   0xb   : > { %p44_p1 = scmp.ne.s32.totalorder %s2767_s16, %s2763_s15  ;;  %p45_p2 = scmp.eq.s32.totalorder %s2787_s21, 0 }
   0xc   : > { %s3539_s24 = smov (%p26_p0, %s25_s24), 0  ;;  %s3541_s25 = smov (!%p26_p0, %s28_s25), %s2783_s20 }
   0xd   : > { %s33_s27 = ssub.s32 %s2779_s19, %s3539_s24  ;;  %p2879_p3 = por %p45_p2, %p44_p1 }
   0xe   : > { %p30_p4 = scmp.ge.s32.totalorder %s3541_s25, 2  ;;  %s117_s29 = sadd.s32 1, %s2759_s14 }
   0xf   : > { %p127_p5 = scmp.ne.s32.totalorder %s2759_s14, %s2755_s13  ;;  %p128_p6 = scmp.eq.s32.totalorder %s1946_s22, 3 }
  0x10   : > { %s3543_s25 = smov (%p30_p4, %s3541_s25), 0  ;;  %p133_p8 = scmp.ne.s32.totalorder %s2755_s13, %s2751_s12 }
  0x11   : > { %p2888_p7 = por %p128_p6, %p127_p5  ;;  %s32_s4 = ssub.s32 %s2783_s20, %s3543_s25 }
  0x12   : > { %p134_p9 = scmp.eq.s32.totalorder %s1947_s23, 3  ;;  %s34_s5 = sor.u32 %s33_s27, %s32_s4 }
  0x13   : > { %p115_p10 = scmp.eq.s32.totalorder %s32_s4, 0  ;;  %p35_p11 = scmp.eq.s32.totalorder %s34_s5, 0 }
  0x14   : > { %p2896_p12 = por %p134_p9, %p133_p8  ;;  %p1949_p13 = scmp.ge.s32.totalorder %s2787_s21, 4 }
  0x15   : > { %s2901_s7 = scalar_select %p115_p10, %s2759_s14, %s117_s29  }
  0x16   : > { %s2904_s8 = scalar_select %p35_p11, %s2767_s16, %s37_s26  }
  0x17   : > { %150 = sbr.rel (%p1949_p13) target bundleno = 114 (0x72), region = 16 }
  0x1e   : > { %153 = sbr.rel (!%p2879_p3) target bundleno = 104 (0x68), region = 20  ;;  %s155_s9 = sand.u32 (%p2879_p3), 1, %s2767_s16  }
  0x1f   : > { %s1952_s10 = sshll.u32 (%p2879_p3), %s2779_s19, 4  ;;  %s1950_s11 = sshll.u32 (%p2879_p3), %s155_s9, 10 }
  0x20   : > { %s1969_s22 = sshll.u32 (%p2879_p3), %s2783_s20, 8  ;;  %s3528_s0 = sld [smem:[#allocation8_spill]] (%p2879_p3) }
  0x21   : > { %s161_s23 = sadd.s32 (%p2879_p3), %s1969_s22, %s1952_s10  ;;  %s2920_s5 = scalar_lea.vmem (%p2879_p3), [#allocation3], %s1950_s11 }
  0x22   : > { %s1954_s27 = sshll.u32 (%p2879_p3), %s161_s23, 3 }
  0x26   : > { %s2915_s26 = scalar_lea.vmem %s3528_s0, %s1954_s27 }
  0x27   : > { %v445_v0 = vld [vmem:[%s2915_s26] sm:$0xff]  ;;  %v447_v1 = vld [vmem:[%s2915_s26 + $0x8] sm:$0xff]  ;;  %v449_v2 = vld [vmem:[%s2915_s26 + $0x10] sm:$0xff] }
  0x28   : > { %446 = vst [vmem:[%s2920_s5] sm:$0xff] %v445_v0  ;;  %448 = vst [vmem:[%s2920_s5 + $0x8] sm:$0xff] %v447_v1  ;;  %v451_v3 = vld [vmem:[%s2915_s26 + $0x18] sm:$0xff]  ;;  %v453_v4 = vld [vmem:[%s2915_s26 + $0x20] sm:$0xff] }
  0x29   : > { %450 = vst [vmem:[%s2920_s5 + $0x10] sm:$0xff] %v449_v2  ;;  %v455_v5 = vld [vmem:[%s2915_s26 + $0x28] sm:$0xff]  ;;  %452 = vst [vmem:[%s2920_s5 + $0x18] sm:$0xff] %v451_v3  ;;  %v457_v6 = vld [vmem:[%s2915_s26 + $0x30] sm:$0xff] }
  0x2a   : > { %454 = vst [vmem:[%s2920_s5 + $0x20] sm:$0xff] %v453_v4  ;;  %456 = vst [vmem:[%s2920_s5 + $0x28] sm:$0xff] %v455_v5  ;;  %v459_v7 = vld [vmem:[%s2915_s26 + $0x38] sm:$0xff]  ;;  %v461_v8 = vld [vmem:[%s2915_s26 + $0x40] sm:$0xff] }
  0x2b   : > { %458 = vst [vmem:[%s2920_s5 + $0x30] sm:$0xff] %v457_v6  ;;  %460 = vst [vmem:[%s2920_s5 + $0x38] sm:$0xff] %v459_v7  ;;  %v463_v9 = vld [vmem:[%s2915_s26 + $0x48] sm:$0xff]  ;;  %v465_v10 = vld [vmem:[%s2915_s26 + $0x50] sm:$0xff] }
  0x2c   : > { %462 = vst [vmem:[%s2920_s5 + $0x40] sm:$0xff] %v461_v8  ;;  %v467_v11 = vld [vmem:[%s2915_s26 + $0x58] sm:$0xff]  ;;  %464 = vst [vmem:[%s2920_s5 + $0x48] sm:$0xff] %v463_v9  ;;  %v469_v12 = vld [vmem:[%s2915_s26 + $0x60] sm:$0xff] }
  0x2d   : > { %466 = vst [vmem:[%s2920_s5 + $0x50] sm:$0xff] %v465_v10  ;;  %468 = vst [vmem:[%s2920_s5 + $0x58] sm:$0xff] %v467_v11  ;;  %v471_v13 = vld [vmem:[%s2915_s26 + $0x68] sm:$0xff]  ;;  %v473_v14 = vld [vmem:[%s2915_s26 + $0x70] sm:$0xff] }
  0x2e   : > { %470 = vst [vmem:[%s2920_s5 + $0x60] sm:$0xff] %v469_v12  ;;  %472 = vst [vmem:[%s2920_s5 + $0x68] sm:$0xff] %v471_v13  ;;  %v475_v15 = vld [vmem:[%s2915_s26 + $0x78] sm:$0xff]  ;;  %v477_v16 = vld [vmem:[%s2915_s26 + $0x100] sm:$0xff] }
  0x2f   : > { %474 = vst [vmem:[%s2920_s5 + $0x70] sm:$0xff] %v473_v14  ;;  %v479_v17 = vld [vmem:[%s2915_s26 + $0x108] sm:$0xff]  ;;  %476 = vst [vmem:[%s2920_s5 + $0x78] sm:$0xff] %v475_v15  ;;  %v481_v18 = vld [vmem:[%s2915_s26 + $0x110] sm:$0xff] }
  0x30   : > { %478 = vst [vmem:[%s2920_s5 + $0x80] sm:$0xff] %v477_v16  ;;  %480 = vst [vmem:[%s2920_s5 + $0x88] sm:$0xff] %v479_v17  ;;  %v483_v19 = vld [vmem:[%s2915_s26 + $0x118] sm:$0xff]  ;;  %v485_v20 = vld [vmem:[%s2915_s26 + $0x120] sm:$0xff] }
  0x31   : > { %482 = vst [vmem:[%s2920_s5 + $0x90] sm:$0xff] %v481_v18  ;;  %484 = vst [vmem:[%s2920_s5 + $0x98] sm:$0xff] %v483_v19  ;;  %v487_v21 = vld [vmem:[%s2915_s26 + $0x128] sm:$0xff]  ;;  %v489_v22 = vld [vmem:[%s2915_s26 + $0x130] sm:$0xff] }
  0x32   : > { %486 = vst [vmem:[%s2920_s5 + $0xa0] sm:$0xff] %v485_v20  ;;  %v491_v23 = vld [vmem:[%s2915_s26 + $0x138] sm:$0xff]  ;;  %488 = vst [vmem:[%s2920_s5 + $0xa8] sm:$0xff] %v487_v21  ;;  %v493_v24 = vld [vmem:[%s2915_s26 + $0x140] sm:$0xff] }
  0x33   : > { %490 = vst [vmem:[%s2920_s5 + $0xb0] sm:$0xff] %v489_v22  ;;  %492 = vst [vmem:[%s2920_s5 + $0xb8] sm:$0xff] %v491_v23  ;;  %v495_v25 = vld [vmem:[%s2915_s26 + $0x148] sm:$0xff]  ;;  %v497_v26 = vld [vmem:[%s2915_s26 + $0x150] sm:$0xff] }
  0x34   : > { %494 = vst [vmem:[%s2920_s5 + $0xc0] sm:$0xff] %v493_v24  ;;  %496 = vst [vmem:[%s2920_s5 + $0xc8] sm:$0xff] %v495_v25  ;;  %v499_v27 = vld [vmem:[%s2915_s26 + $0x158] sm:$0xff]  ;;  %v501_v28 = vld [vmem:[%s2915_s26 + $0x160] sm:$0xff] }
  0x35   : > { %498 = vst [vmem:[%s2920_s5 + $0xd0] sm:$0xff] %v497_v26  ;;  %v503_v29 = vld [vmem:[%s2915_s26 + $0x168] sm:$0xff]  ;;  %500 = vst [vmem:[%s2920_s5 + $0xd8] sm:$0xff] %v499_v27  ;;  %v505_v30 = vld [vmem:[%s2915_s26 + $0x170] sm:$0xff] }
  0x36   : > { %502 = vst [vmem:[%s2920_s5 + $0xe0] sm:$0xff] %v501_v28  ;;  %504 = vst [vmem:[%s2920_s5 + $0xe8] sm:$0xff] %v503_v29  ;;  %v507_v31 = vld [vmem:[%s2915_s26 + $0x178] sm:$0xff]  ;;  %v509_v32 = vld [vmem:[%s2915_s26 + $0x200] sm:$0xff] }
  0x37   : > { %506 = vst [vmem:[%s2920_s5 + $0xf0] sm:$0xff] %v505_v30  ;;  %508 = vst [vmem:[%s2920_s5 + $0xf8] sm:$0xff] %v507_v31  ;;  %v511_v33 = vld [vmem:[%s2915_s26 + $0x208] sm:$0xff]  ;;  %v513_v34 = vld [vmem:[%s2915_s26 + $0x210] sm:$0xff] }
  0x38   : > { %510 = vst [vmem:[%s2920_s5 + $0x100] sm:$0xff] %v509_v32  ;;  %v515_v35 = vld [vmem:[%s2915_s26 + $0x218] sm:$0xff]  ;;  %512 = vst [vmem:[%s2920_s5 + $0x108] sm:$0xff] %v511_v33  ;;  %v517_v36 = vld [vmem:[%s2915_s26 + $0x220] sm:$0xff] }
  0x39   : > { %514 = vst [vmem:[%s2920_s5 + $0x110] sm:$0xff] %v513_v34  ;;  %516 = vst [vmem:[%s2920_s5 + $0x118] sm:$0xff] %v515_v35  ;;  %v519_v37 = vld [vmem:[%s2915_s26 + $0x228] sm:$0xff]  ;;  %v521_v38 = vld [vmem:[%s2915_s26 + $0x230] sm:$0xff] }
  0x3a   : > { %518 = vst [vmem:[%s2920_s5 + $0x120] sm:$0xff] %v517_v36  ;;  %520 = vst [vmem:[%s2920_s5 + $0x128] sm:$0xff] %v519_v37  ;;  %v523_v39 = vld [vmem:[%s2915_s26 + $0x238] sm:$0xff]  ;;  %v525_v40 = vld [vmem:[%s2915_s26 + $0x240] sm:$0xff] }
  0x3b   : > { %522 = vst [vmem:[%s2920_s5 + $0x130] sm:$0xff] %v521_v38  ;;  %v527_v41 = vld [vmem:[%s2915_s26 + $0x248] sm:$0xff]  ;;  %524 = vst [vmem:[%s2920_s5 + $0x138] sm:$0xff] %v523_v39  ;;  %v529_v42 = vld [vmem:[%s2915_s26 + $0x250] sm:$0xff] }
  0x3c   : > { %526 = vst [vmem:[%s2920_s5 + $0x140] sm:$0xff] %v525_v40  ;;  %528 = vst [vmem:[%s2920_s5 + $0x148] sm:$0xff] %v527_v41  ;;  %v531_v43 = vld [vmem:[%s2915_s26 + $0x258] sm:$0xff]  ;;  %v533_v44 = vld [vmem:[%s2915_s26 + $0x260] sm:$0xff] }
  0x3d   : > { %530 = vst [vmem:[%s2920_s5 + $0x150] sm:$0xff] %v529_v42  ;;  %532 = vst [vmem:[%s2920_s5 + $0x158] sm:$0xff] %v531_v43  ;;  %v535_v45 = vld [vmem:[%s2915_s26 + $0x268] sm:$0xff]  ;;  %v537_v46 = vld [vmem:[%s2915_s26 + $0x270] sm:$0xff] }
  0x3e   : > { %534 = vst [vmem:[%s2920_s5 + $0x160] sm:$0xff] %v533_v44  ;;  %v539_v47 = vld [vmem:[%s2915_s26 + $0x278] sm:$0xff]  ;;  %536 = vst [vmem:[%s2920_s5 + $0x168] sm:$0xff] %v535_v45  ;;  %v541_v48 = vld [vmem:[%s2915_s26 + $0x300] sm:$0xff] }
  0x3f   : > { %538 = vst [vmem:[%s2920_s5 + $0x170] sm:$0xff] %v537_v46  ;;  %540 = vst [vmem:[%s2920_s5 + $0x178] sm:$0xff] %v539_v47  ;;  %v543_v49 = vld [vmem:[%s2915_s26 + $0x308] sm:$0xff]  ;;  %v545_v50 = vld [vmem:[%s2915_s26 + $0x310] sm:$0xff] }
  0x40   : > { %542 = vst [vmem:[%s2920_s5 + $0x180] sm:$0xff] %v541_v48  ;;  %544 = vst [vmem:[%s2920_s5 + $0x188] sm:$0xff] %v543_v49  ;;  %v547_v51 = vld [vmem:[%s2915_s26 + $0x318] sm:$0xff]  ;;  %v549_v52 = vld [vmem:[%s2915_s26 + $0x320] sm:$0xff] }
  0x41   : > { %546 = vst [vmem:[%s2920_s5 + $0x190] sm:$0xff] %v545_v50  ;;  %v551_v53 = vld [vmem:[%s2915_s26 + $0x328] sm:$0xff]  ;;  %548 = vst [vmem:[%s2920_s5 + $0x198] sm:$0xff] %v547_v51  ;;  %v553_v54 = vld [vmem:[%s2915_s26 + $0x330] sm:$0xff] }
  0x42   : > { %550 = vst [vmem:[%s2920_s5 + $0x1a0] sm:$0xff] %v549_v52  ;;  %552 = vst [vmem:[%s2920_s5 + $0x1a8] sm:$0xff] %v551_v53  ;;  %v555_v55 = vld [vmem:[%s2915_s26 + $0x338] sm:$0xff]  ;;  %v557_v56 = vld [vmem:[%s2915_s26 + $0x340] sm:$0xff] }
  0x43   : > { %554 = vst [vmem:[%s2920_s5 + $0x1b0] sm:$0xff] %v553_v54  ;;  %556 = vst [vmem:[%s2920_s5 + $0x1b8] sm:$0xff] %v555_v55  ;;  %v559_v57 = vld [vmem:[%s2915_s26 + $0x348] sm:$0xff]  ;;  %v561_v58 = vld [vmem:[%s2915_s26 + $0x350] sm:$0xff] }
  0x44   : > { %558 = vst [vmem:[%s2920_s5 + $0x1c0] sm:$0xff] %v557_v56  ;;  %v563_v59 = vld [vmem:[%s2915_s26 + $0x358] sm:$0xff]  ;;  %560 = vst [vmem:[%s2920_s5 + $0x1c8] sm:$0xff] %v559_v57  ;;  %v565_v60 = vld [vmem:[%s2915_s26 + $0x360] sm:$0xff] }
  0x45   : > { %562 = vst [vmem:[%s2920_s5 + $0x1d0] sm:$0xff] %v561_v58  ;;  %564 = vst [vmem:[%s2920_s5 + $0x1d8] sm:$0xff] %v563_v59  ;;  %v567_v61 = vld [vmem:[%s2915_s26 + $0x368] sm:$0xff]  ;;  %v569_v62 = vld [vmem:[%s2915_s26 + $0x370] sm:$0xff] }
  0x46   : > { %566 = vst [vmem:[%s2920_s5 + $0x1e0] sm:$0xff] %v565_v60  ;;  %568 = vst [vmem:[%s2920_s5 + $0x1e8] sm:$0xff] %v567_v61  ;;  %v571_v63 = vld [vmem:[%s2915_s26 + $0x378] sm:$0xff]  ;;  %v573_v0 = vld [vmem:[%s2915_s26 + $0x400] sm:$0xff] }
  0x47   : > { %570 = vst [vmem:[%s2920_s5 + $0x1f0] sm:$0xff] %v569_v62  ;;  %v575_v1 = vld [vmem:[%s2915_s26 + $0x408] sm:$0xff]  ;;  %572 = vst [vmem:[%s2920_s5 + $0x1f8] sm:$0xff] %v571_v63  ;;  %v577_v2 = vld [vmem:[%s2915_s26 + $0x410] sm:$0xff] }
  0x48   : > { %574 = vst [vmem:[%s2920_s5 + $0x200] sm:$0xff] %v573_v0  ;;  %576 = vst [vmem:[%s2920_s5 + $0x208] sm:$0xff] %v575_v1  ;;  %v579_v3 = vld [vmem:[%s2915_s26 + $0x418] sm:$0xff]  ;;  %v581_v4 = vld [vmem:[%s2915_s26 + $0x420] sm:$0xff] }
  0x49   : > { %578 = vst [vmem:[%s2920_s5 + $0x210] sm:$0xff] %v577_v2  ;;  %580 = vst [vmem:[%s2920_s5 + $0x218] sm:$0xff] %v579_v3  ;;  %v583_v5 = vld [vmem:[%s2915_s26 + $0x428] sm:$0xff]  ;;  %v585_v6 = vld [vmem:[%s2915_s26 + $0x430] sm:$0xff] }
  0x4a   : > { %582 = vst [vmem:[%s2920_s5 + $0x220] sm:$0xff] %v581_v4  ;;  %v587_v7 = vld [vmem:[%s2915_s26 + $0x438] sm:$0xff]  ;;  %584 = vst [vmem:[%s2920_s5 + $0x228] sm:$0xff] %v583_v5  ;;  %v589_v8 = vld [vmem:[%s2915_s26 + $0x440] sm:$0xff] }
  0x4b   : > { %586 = vst [vmem:[%s2920_s5 + $0x230] sm:$0xff] %v585_v6  ;;  %588 = vst [vmem:[%s2920_s5 + $0x238] sm:$0xff] %v587_v7  ;;  %v591_v9 = vld [vmem:[%s2915_s26 + $0x448] sm:$0xff]  ;;  %v593_v10 = vld [vmem:[%s2915_s26 + $0x450] sm:$0xff] }
  0x4c   : > { %590 = vst [vmem:[%s2920_s5 + $0x240] sm:$0xff] %v589_v8  ;;  %592 = vst [vmem:[%s2920_s5 + $0x248] sm:$0xff] %v591_v9  ;;  %v595_v11 = vld [vmem:[%s2915_s26 + $0x458] sm:$0xff]  ;;  %v597_v12 = vld [vmem:[%s2915_s26 + $0x460] sm:$0xff] }
  0x4d   : > { %594 = vst [vmem:[%s2920_s5 + $0x250] sm:$0xff] %v593_v10  ;;  %v599_v13 = vld [vmem:[%s2915_s26 + $0x468] sm:$0xff]  ;;  %596 = vst [vmem:[%s2920_s5 + $0x258] sm:$0xff] %v595_v11  ;;  %v601_v14 = vld [vmem:[%s2915_s26 + $0x470] sm:$0xff] }
  0x4e   : > { %598 = vst [vmem:[%s2920_s5 + $0x260] sm:$0xff] %v597_v12  ;;  %600 = vst [vmem:[%s2920_s5 + $0x268] sm:$0xff] %v599_v13  ;;  %v603_v15 = vld [vmem:[%s2915_s26 + $0x478] sm:$0xff]  ;;  %v605_v16 = vld [vmem:[%s2915_s26 + $0x500] sm:$0xff] }
  0x4f   : > { %602 = vst [vmem:[%s2920_s5 + $0x270] sm:$0xff] %v601_v14  ;;  %604 = vst [vmem:[%s2920_s5 + $0x278] sm:$0xff] %v603_v15  ;;  %v607_v17 = vld [vmem:[%s2915_s26 + $0x508] sm:$0xff]  ;;  %v609_v18 = vld [vmem:[%s2915_s26 + $0x510] sm:$0xff] }
  0x50   : > { %606 = vst [vmem:[%s2920_s5 + $0x280] sm:$0xff] %v605_v16  ;;  %v611_v19 = vld [vmem:[%s2915_s26 + $0x518] sm:$0xff]  ;;  %608 = vst [vmem:[%s2920_s5 + $0x288] sm:$0xff] %v607_v17  ;;  %v613_v20 = vld [vmem:[%s2915_s26 + $0x520] sm:$0xff] }
  0x51   : > { %610 = vst [vmem:[%s2920_s5 + $0x290] sm:$0xff] %v609_v18  ;;  %612 = vst [vmem:[%s2920_s5 + $0x298] sm:$0xff] %v611_v19  ;;  %v615_v21 = vld [vmem:[%s2915_s26 + $0x528] sm:$0xff]  ;;  %v617_v22 = vld [vmem:[%s2915_s26 + $0x530] sm:$0xff] }
  0x52   : > { %614 = vst [vmem:[%s2920_s5 + $0x2a0] sm:$0xff] %v613_v20  ;;  %616 = vst [vmem:[%s2920_s5 + $0x2a8] sm:$0xff] %v615_v21  ;;  %v619_v23 = vld [vmem:[%s2915_s26 + $0x538] sm:$0xff]  ;;  %v621_v24 = vld [vmem:[%s2915_s26 + $0x540] sm:$0xff] }
  0x53   : > { %618 = vst [vmem:[%s2920_s5 + $0x2b0] sm:$0xff] %v617_v22  ;;  %v623_v25 = vld [vmem:[%s2915_s26 + $0x548] sm:$0xff]  ;;  %620 = vst [vmem:[%s2920_s5 + $0x2b8] sm:$0xff] %v619_v23  ;;  %v625_v26 = vld [vmem:[%s2915_s26 + $0x550] sm:$0xff] }
  0x54   : > { %622 = vst [vmem:[%s2920_s5 + $0x2c0] sm:$0xff] %v621_v24  ;;  %624 = vst [vmem:[%s2920_s5 + $0x2c8] sm:$0xff] %v623_v25  ;;  %v627_v27 = vld [vmem:[%s2915_s26 + $0x558] sm:$0xff]  ;;  %v629_v28 = vld [vmem:[%s2915_s26 + $0x560] sm:$0xff] }
  0x55   : > { %626 = vst [vmem:[%s2920_s5 + $0x2d0] sm:$0xff] %v625_v26  ;;  %628 = vst [vmem:[%s2920_s5 + $0x2d8] sm:$0xff] %v627_v27  ;;  %v631_v29 = vld [vmem:[%s2915_s26 + $0x568] sm:$0xff]  ;;  %v633_v30 = vld [vmem:[%s2915_s26 + $0x570] sm:$0xff] }
  0x56   : > { %630 = vst [vmem:[%s2920_s5 + $0x2e0] sm:$0xff] %v629_v28  ;;  %v635_v31 = vld [vmem:[%s2915_s26 + $0x578] sm:$0xff]  ;;  %632 = vst [vmem:[%s2920_s5 + $0x2e8] sm:$0xff] %v631_v29  ;;  %v637_v32 = vld [vmem:[%s2915_s26 + $0x600] sm:$0xff] }
  0x57   : > { %634 = vst [vmem:[%s2920_s5 + $0x2f0] sm:$0xff] %v633_v30  ;;  %636 = vst [vmem:[%s2920_s5 + $0x2f8] sm:$0xff] %v635_v31  ;;  %v639_v33 = vld [vmem:[%s2915_s26 + $0x608] sm:$0xff]  ;;  %v641_v34 = vld [vmem:[%s2915_s26 + $0x610] sm:$0xff] }
  0x58   : > { %638 = vst [vmem:[%s2920_s5 + $0x300] sm:$0xff] %v637_v32  ;;  %640 = vst [vmem:[%s2920_s5 + $0x308] sm:$0xff] %v639_v33  ;;  %v643_v35 = vld [vmem:[%s2915_s26 + $0x618] sm:$0xff]  ;;  %v645_v36 = vld [vmem:[%s2915_s26 + $0x620] sm:$0xff] }
  0x59   : > { %642 = vst [vmem:[%s2920_s5 + $0x310] sm:$0xff] %v641_v34  ;;  %v647_v37 = vld [vmem:[%s2915_s26 + $0x628] sm:$0xff]  ;;  %644 = vst [vmem:[%s2920_s5 + $0x318] sm:$0xff] %v643_v35  ;;  %v649_v38 = vld [vmem:[%s2915_s26 + $0x630] sm:$0xff] }
  0x5a   : > { %646 = vst [vmem:[%s2920_s5 + $0x320] sm:$0xff] %v645_v36  ;;  %648 = vst [vmem:[%s2920_s5 + $0x328] sm:$0xff] %v647_v37  ;;  %v651_v39 = vld [vmem:[%s2915_s26 + $0x638] sm:$0xff]  ;;  %v653_v40 = vld [vmem:[%s2915_s26 + $0x640] sm:$0xff] }
  0x5b   : > { %650 = vst [vmem:[%s2920_s5 + $0x330] sm:$0xff] %v649_v38  ;;  %652 = vst [vmem:[%s2920_s5 + $0x338] sm:$0xff] %v651_v39  ;;  %v655_v41 = vld [vmem:[%s2915_s26 + $0x648] sm:$0xff]  ;;  %v657_v42 = vld [vmem:[%s2915_s26 + $0x650] sm:$0xff] }
  0x5c   : > { %654 = vst [vmem:[%s2920_s5 + $0x340] sm:$0xff] %v653_v40  ;;  %v659_v43 = vld [vmem:[%s2915_s26 + $0x658] sm:$0xff]  ;;  %656 = vst [vmem:[%s2920_s5 + $0x348] sm:$0xff] %v655_v41  ;;  %v661_v44 = vld [vmem:[%s2915_s26 + $0x660] sm:$0xff] }
  0x5d   : > { %658 = vst [vmem:[%s2920_s5 + $0x350] sm:$0xff] %v657_v42  ;;  %660 = vst [vmem:[%s2920_s5 + $0x358] sm:$0xff] %v659_v43  ;;  %v663_v45 = vld [vmem:[%s2915_s26 + $0x668] sm:$0xff]  ;;  %v665_v46 = vld [vmem:[%s2915_s26 + $0x670] sm:$0xff] }
  0x5e   : > { %662 = vst [vmem:[%s2920_s5 + $0x360] sm:$0xff] %v661_v44  ;;  %664 = vst [vmem:[%s2920_s5 + $0x368] sm:$0xff] %v663_v45  ;;  %v667_v47 = vld [vmem:[%s2915_s26 + $0x678] sm:$0xff]  ;;  %v669_v48 = vld [vmem:[%s2915_s26 + $0x700] sm:$0xff] }
  0x5f   : > { %666 = vst [vmem:[%s2920_s5 + $0x370] sm:$0xff] %v665_v46  ;;  %v671_v49 = vld [vmem:[%s2915_s26 + $0x708] sm:$0xff]  ;;  %668 = vst [vmem:[%s2920_s5 + $0x378] sm:$0xff] %v667_v47  ;;  %v673_v50 = vld [vmem:[%s2915_s26 + $0x710] sm:$0xff] }
  0x60   : > { %670 = vst [vmem:[%s2920_s5 + $0x380] sm:$0xff] %v669_v48  ;;  %672 = vst [vmem:[%s2920_s5 + $0x388] sm:$0xff] %v671_v49  ;;  %v675_v51 = vld [vmem:[%s2915_s26 + $0x718] sm:$0xff]  ;;  %v677_v52 = vld [vmem:[%s2915_s26 + $0x720] sm:$0xff] }
  0x61   : > { %674 = vst [vmem:[%s2920_s5 + $0x390] sm:$0xff] %v673_v50  ;;  %676 = vst [vmem:[%s2920_s5 + $0x398] sm:$0xff] %v675_v51  ;;  %v679_v53 = vld [vmem:[%s2915_s26 + $0x728] sm:$0xff]  ;;  %v681_v54 = vld [vmem:[%s2915_s26 + $0x730] sm:$0xff] }
  0x62   : > { %678 = vst [vmem:[%s2920_s5 + $0x3a0] sm:$0xff] %v677_v52  ;;  %v683_v55 = vld [vmem:[%s2915_s26 + $0x738] sm:$0xff]  ;;  %680 = vst [vmem:[%s2920_s5 + $0x3a8] sm:$0xff] %v679_v53  ;;  %v685_v56 = vld [vmem:[%s2915_s26 + $0x740] sm:$0xff] }
  0x63   : > { %682 = vst [vmem:[%s2920_s5 + $0x3b0] sm:$0xff] %v681_v54  ;;  %684 = vst [vmem:[%s2920_s5 + $0x3b8] sm:$0xff] %v683_v55  ;;  %v687_v57 = vld [vmem:[%s2915_s26 + $0x748] sm:$0xff]  ;;  %v689_v58 = vld [vmem:[%s2915_s26 + $0x750] sm:$0xff] }
  0x64   : > { %686 = vst [vmem:[%s2920_s5 + $0x3c0] sm:$0xff] %v685_v56  ;;  %688 = vst [vmem:[%s2920_s5 + $0x3c8] sm:$0xff] %v687_v57  ;;  %v691_v59 = vld [vmem:[%s2915_s26 + $0x758] sm:$0xff]  ;;  %v693_v60 = vld [vmem:[%s2915_s26 + $0x760] sm:$0xff] }
  0x65   : > { %690 = vst [vmem:[%s2920_s5 + $0x3d0] sm:$0xff] %v689_v58  ;;  %v695_v61 = vld [vmem:[%s2915_s26 + $0x768] sm:$0xff]  ;;  %692 = vst [vmem:[%s2920_s5 + $0x3d8] sm:$0xff] %v691_v59  ;;  %v697_v62 = vld [vmem:[%s2915_s26 + $0x770] sm:$0xff] }
  0x66   : > { %694 = vst [vmem:[%s2920_s5 + $0x3e0] sm:$0xff] %v693_v60  ;;  %696 = vst [vmem:[%s2920_s5 + $0x3e8] sm:$0xff] %v695_v61  ;;  %v699_v63 = vld [vmem:[%s2915_s26 + $0x778] sm:$0xff] }
  0x67   : > { %698 = vst [vmem:[%s2920_s5 + $0x3f0] sm:$0xff] %v697_v62  ;;  %700 = vst [vmem:[%s2920_s5 + $0x3f8] sm:$0xff] %v699_v63 }
  0x68 PF: > { %706 = sbr.rel (!%p2879_p3) target bundleno = 114 (0x72), region = 58  ;;  %s708_s9 = sand.u32 (%p2879_p3), 1, %s2767_s16  }
  0x69   : > { %s1970_s10 = sshll.u32 (%p2879_p3), %s2783_s20, 4  ;;  %s1955_s11 = sshll.u32 (%p2879_p3), %s708_s9, 3 }
  0x6a   : > { %s713_s22 = sadd.s32 (%p2879_p3), %s2779_s19, %s1970_s10  ;;  %s710_s29 = scalar_lea.vmem (%p2879_p3), [#allocation4], %s1955_s11 }
  0x6b   : > { %s714_s4 = scalar_lea.vmem (%p2879_p3), %s3521_s1, %s713_s22 }
  0x6c   : > { %v730_v0 = vld [vmem:[%s714_s4] sm:$0x1] (%p2879_p3)  ;;  %v732_v1 = vld [vmem:[%s714_s4 + $0x2] sm:$0x1] (%p2879_p3)  ;;  %v734_v2 = vld [vmem:[%s714_s4 + $0x4] sm:$0x1] (%p2879_p3) }
  0x6d   : > { %731 = vst [vmem:[%s710_s29] sm:$0x1] (%p2879_p3), %v730_v0  ;;  %733 = vst [vmem:[%s710_s29 + $0x1] sm:$0x1] (%p2879_p3), %v732_v1  ;;  %v736_v3 = vld [vmem:[%s714_s4 + $0x6] sm:$0x1] (%p2879_p3) }
  0x6e   : > { %735 = vst [vmem:[%s710_s29 + $0x2] sm:$0x1] (%p2879_p3), %v734_v2  ;;  %v738_v4 = vld [vmem:[%s714_s4 + $0x8] sm:$0x1] (%p2879_p3)  ;;  %v740_v5 = vld [vmem:[%s714_s4 + $0xa] sm:$0x1] (%p2879_p3) }
  0x6f   : > { %737 = vst [vmem:[%s710_s29 + $0x3] sm:$0x1] %v736_v3  ;;  %739 = vst [vmem:[%s710_s29 + $0x4] sm:$0x1] %v738_v4  ;;  %v742_v6 = vld [vmem:[%s714_s4 + $0xc] sm:$0x1] }
  0x70   : > { %741 = vst [vmem:[%s710_s29 + $0x5] sm:$0x1] %v740_v5  ;;  %v744_v7 = vld [vmem:[%s714_s4 + $0xe] sm:$0x1]  ;;  %743 = vst [vmem:[%s710_s29 + $0x6] sm:$0x1] %v742_v6 }
  0x71   : > { %745 = vst [vmem:[%s710_s29 + $0x7] sm:$0x1] %v744_v7 }
  0x72 PF: > { %p1958_p0 = scmp.ge.s32.totalorder %s2787_s21, 1  ;;  %p790_p1 = scmp.lt.s32.totalorder %s2787_s21, 5 }
  0x74   : > { %p791_p2 = pnand %p1958_p0, %p790_p1 }
  0x75   : > { %s797_s28 = sand.u32 (!%p791_p2), 1, %s2763_s15   ;;  %s832_s26 = sand.u32 (!%p791_p2), 1, %s2755_s13  }
  0x76   : > { %794 = sbr.rel (%p791_p2) target bundleno = 696 (0x2b8), region = 103  ;;  %s1959_s5 = sshll.u32 (!%p791_p2), %s797_s28, 10 }
  0x77   : > { %s1960_s9 = sshll.u32 (!%p791_p2), %s797_s28, 3  ;;  %s3189_s10 = sshll.u32 (!%p791_p2), %s832_s26, 3 }
  0x78   : > { %p838_p3 = scmp.lt.s32.totalorder (!%p791_p2), %s2775_s18, 1  ;;  %s3198_s29 = scalar_lea.vmem (!%p791_p2), [#allocation3], %s1959_s5 }
  0x79   : > { %s3200_s0 = scalar_lea.vmem (!%p791_p2), [#allocation4], %s1960_s9  ;;  %s834_s15 = scalar_lea.vmem (!%p791_p2), [#allocation5], %s3189_s10 }
  0x7a   : > { %p1963_p4 = scmp.ne.s32.totalorder (!%p791_p2), %s2771_s17, 0 }
  0x7d   : > { %s839_s11 = scalar_select %p838_p3, %s2775_s18, 1 }
  0x7e   : > { %845 = sbr.rel (%p1963_p4) target bundleno = 133 (0x85), region = 115  ;;  %vm846_vm0 = vcmask (!%p1963_p4), 516096   ;;  %v2789_v8 = vmov (!%p1963_p4), 0.0  }
  0x7f   : > { %s1962_s22 = sshll.u32 %s839_s11, 3  ;;  %847 = vst.msk [vmem:[#allocation2] sm:$0x1] (!%p1963_p4), %vm846_vm0, %v2789_v8  ;;  %848 = vst.msk [vmem:[#allocation2 + $0x1] sm:$0x1] (!%p1963_p4), %vm846_vm0, %v2789_v8 }
  0x80   : > { %s3196_s4 = scalar_lea.vmem %s3522_s2, %s1962_s22  ;;  %849 = vst.msk [vmem:[#allocation2 + $0x2] sm:$0x1] (!%p1963_p4), %vm846_vm0, %v2789_v8  ;;  %850 = vst.msk [vmem:[#allocation2 + $0x3] sm:$0x1] (!%p1963_p4), %vm846_vm0, %v2789_v8 }
  0x81   : > { %851 = vst.msk [vmem:[#allocation2 + $0x4] sm:$0x1] (!%p1963_p4), %vm846_vm0, %v2789_v8  ;;  %852 = vst.msk [vmem:[#allocation2 + $0x5] sm:$0x1] (!%p1963_p4), %vm846_vm0, %v2789_v8 }
  0x82   : > { %853 = vst.msk [vmem:[#allocation2 + $0x6] sm:$0x1] (!%p1963_p4), %vm846_vm0, %v2789_v8  ;;  %854 = vst.msk [vmem:[#allocation2 + $0x7] sm:$0x1] (!%p1963_p4), %vm846_vm0, %v2789_v8 }
  0x85 PF: > { %v871_v9 = vld [vmem:[%s3198_s29] sm:$0xff]  ;;  %v872_v10 = vld [vmem:[%s3198_s29 + $0x8] sm:$0xff]  ;;  %v2790_v12 = vmov 0.0|0.0   ;;  %v873_v15 = vld [vmem:[%s3198_s29 + $0x10] sm:$0xff]  ;;  %vm2791_vm1 = vmmov 0   ;;  %v2792_v20 = vmov 0.0  }
  0x86   : > { %v887_v11 = vld [vmem:[%s3198_s29 + $0x80] sm:$0xff]  ;;  %2387 = vmatprep.subr.bf16.mxu0 %v2790_v12  ;;  %2411 = vmatprep.subr.bf16.mxu1 %v2790_v12  ;;  %v2388_v13 = vpack.c.bf16 %v872_v10, %v871_v9  ;;  %v888_v14 = vld [vmem:[%s3198_s29 + $0x88] sm:$0xff]  ;;  %v874_v16 = vld [vmem:[%s3198_s29 + $0x18] sm:$0xff]  ;;  %vm1567_vm2 = vcmask 516096   ;;  %p1964_p5 = scmp.ne.s32.totalorder %s2771_s17, 1 }
  0x87   : > { %v2412_v17 = vpack.c.bf16 %v888_v14, %v887_v11  ;;  %v889_v18 = vld [vmem:[%s3198_s29 + $0x90] sm:$0xff]  ;;  %v890_v19 = vld [vmem:[%s3198_s29 + $0x98] sm:$0xff]  ;;  %2139 = vmatprep.mubr.msk.f32.mxu0 %vm2791_vm1, %v2792_v20  ;;  %2174 = vmatprep.mubr.msk.f32.mxu1 %vm2791_vm1, %v2792_v20  ;;  %v2391_v21 = vpack.c.bf16 %v874_v16, %v873_v15  ;;  %v875_v23 = vld [vmem:[%s3198_s29 + $0x20] sm:$0xff]  ;;  %vm1708_vm3 = vcmask (!%p1964_p5), 523264  }
  0x88   : > { %2389 = vmatpush3.bf16.msra.mxu0 %v2388_v13  ;;  %v2415_v22 = vpack.c.bf16 %v890_v19, %v889_v18  ;;  %v876_v24 = vld [vmem:[%s3198_s29 + $0x28] sm:$0xff]  ;;  %v891_v25 = vld [vmem:[%s3198_s29 + $0xa0] sm:$0xff]  ;;  %v877_v29 = vld [vmem:[%s3198_s29 + $0x30] sm:$0xff] }
  0x89   : > { %2413 = vmatpush3.bf16.msra.mxu1 %v2412_v17  ;;  %2390 = vmatprep.subr.bf16.mxu0 %v2790_v12  ;;  %v892_v26 = vld [vmem:[%s3198_s29 + $0xa8] sm:$0xff]  ;;  %v2394_v27 = vpack.c.bf16 %v876_v24, %v875_v23  ;;  %v878_v30 = vld [vmem:[%s3198_s29 + $0x38] sm:$0xff]  ;;  %v893_v31 = vld [vmem:[%s3198_s29 + $0xb0] sm:$0xff] }
  0x8a   : > { %2414 = vmatprep.subr.bf16.mxu1 %v2790_v12  ;;  %v2418_v28 = vpack.c.bf16 %v892_v26, %v891_v25  ;;  %v894_v32 = vld [vmem:[%s3198_s29 + $0xb8] sm:$0xff]  ;;  %v2397_v33 = vpack.c.bf16 %v878_v30, %v877_v29  ;;  %v879_v35 = vld [vmem:[%s3198_s29 + $0x40] sm:$0xff]  ;;  %v880_v36 = vld [vmem:[%s3198_s29 + $0x48] sm:$0xff] }
  0x8b   : > { %v2421_v34 = vpack.c.bf16 %v894_v32, %v893_v31  ;;  %v895_v37 = vld [vmem:[%s3198_s29 + $0xc0] sm:$0xff]  ;;  %v896_v38 = vld [vmem:[%s3198_s29 + $0xc8] sm:$0xff]  ;;  %v2400_v39 = vpack.c.bf16 %v880_v36, %v879_v35  ;;  %v881_v41 = vld [vmem:[%s3198_s29 + $0x50] sm:$0xff] }
  0x8c   : > { %2392 = vmatpush3.bf16.msra.mxu0 %v2391_v21  ;;  %v2424_v40 = vpack.c.bf16 %v896_v38, %v895_v37  ;;  %v882_v42 = vld [vmem:[%s3198_s29 + $0x58] sm:$0xff]  ;;  %v897_v43 = vld [vmem:[%s3198_s29 + $0xd0] sm:$0xff]  ;;  %v883_v47 = vld [vmem:[%s3198_s29 + $0x60] sm:$0xff] }
  0x8d   : > { %2416 = vmatpush3.bf16.msra.mxu1 %v2415_v22  ;;  %2393 = vmatprep.subr.bf16.mxu0 %v2790_v12  ;;  %v898_v44 = vld [vmem:[%s3198_s29 + $0xd8] sm:$0xff]  ;;  %v2403_v45 = vpack.c.bf16 %v882_v42, %v881_v41  ;;  %v884_v48 = vld [vmem:[%s3198_s29 + $0x68] sm:$0xff]  ;;  %v899_v49 = vld [vmem:[%s3198_s29 + $0xe0] sm:$0xff] }
  0x8e   : > { %2417 = vmatprep.subr.bf16.mxu1 %v2790_v12  ;;  %v2427_v46 = vpack.c.bf16 %v898_v44, %v897_v43  ;;  %v900_v50 = vld [vmem:[%s3198_s29 + $0xe8] sm:$0xff]  ;;  %v2406_v51 = vpack.c.bf16 %v884_v48, %v883_v47  ;;  %v885_v53 = vld [vmem:[%s3198_s29 + $0x70] sm:$0xff]  ;;  %v886_v54 = vld [vmem:[%s3198_s29 + $0x78] sm:$0xff] }
  0x8f   : > { %v2430_v52 = vpack.c.bf16 %v900_v50, %v899_v49  ;;  %v901_v55 = vld [vmem:[%s3198_s29 + $0xf0] sm:$0xff]  ;;  %v902_v56 = vld [vmem:[%s3198_s29 + $0xf8] sm:$0xff]  ;;  %v2409_v57 = vpack.c.bf16 %v886_v54, %v885_v53  ;;  %v903_v59 = vld [vmem:[%s3198_s29 + $0x100] sm:$0xff] }
  0x90   : > { %2395 = vmatpush3.bf16.msra.mxu0 %v2394_v27  ;;  %v2433_v58 = vpack.c.bf16 %v902_v56, %v901_v55  ;;  %v904_v60 = vld [vmem:[%s3198_s29 + $0x108] sm:$0xff]  ;;  %v919_v61 = vld [vmem:[%s3198_s29 + $0x180] sm:$0xff]  ;;  %v905_v3 = vld [vmem:[%s3198_s29 + $0x110] sm:$0xff] }
  0x91   : > { %2419 = vmatpush3.bf16.msra.mxu1 %v2418_v28  ;;  %2396 = vmatprep.subr.bf16.mxu0 %v2790_v12  ;;  %v920_v62 = vld [vmem:[%s3198_s29 + $0x188] sm:$0xff]  ;;  %v2436_v0 = vpack.c.bf16 %v904_v60, %v903_v59  ;;  %v906_v4 = vld [vmem:[%s3198_s29 + $0x118] sm:$0xff]  ;;  %v921_v5 = vld [vmem:[%s3198_s29 + $0x190] sm:$0xff] }
  0x92   : > { %2420 = vmatprep.subr.bf16.mxu1 %v2790_v12  ;;  %v863_v63 = vld [vmem:[%s3200_s0] sm:$0x1]  ;;  %v864_v1 = vld [vmem:[%s3200_s0 + $0x1] sm:$0x1]  ;;  %v2460_v2 = vpack.c.bf16 %v920_v62, %v919_v61  ;;  %v922_v6 = vld [vmem:[%s3198_s29 + $0x198] sm:$0xff]  ;;  %v2439_v7 = vpack.c.bf16 %v906_v4, %v905_v3 }
  0x93   : > { %v2463_v8 = vpack.c.bf16 %v922_v6, %v921_v5  ;;  %v907_v9 = vld [vmem:[%s3198_s29 + $0x120] sm:$0xff]  ;;  %v908_v10 = vld [vmem:[%s3198_s29 + $0x128] sm:$0xff]  ;;  %v909_v16 = vld [vmem:[%s3198_s29 + $0x130] sm:$0xff] }
  0x94   : > { %2398 = vmatpush3.bf16.msra.mxu0 %v2397_v33  ;;  %v923_v11 = vld [vmem:[%s3198_s29 + $0x1a0] sm:$0xff]  ;;  %v924_v13 = vld [vmem:[%s3198_s29 + $0x1a8] sm:$0xff]  ;;  %v2442_v14 = vpack.c.bf16 %v908_v10, %v907_v9  ;;  %v910_v17 = vld [vmem:[%s3198_s29 + $0x138] sm:$0xff] }
  0x95   : > { %2422 = vmatpush3.bf16.msra.mxu1 %v2421_v34  ;;  %2399 = vmatprep.subr.bf16.mxu0 %v2790_v12  ;;  %v2466_v15 = vpack.c.bf16 %v924_v13, %v923_v11  ;;  %v925_v18 = vld [vmem:[%s3198_s29 + $0x1b0] sm:$0xff]  ;;  %v926_v19 = vld [vmem:[%s3198_s29 + $0x1b8] sm:$0xff]  ;;  %v2445_v21 = vpack.c.bf16 %v910_v17, %v909_v16  ;;  %v911_v23 = vld [vmem:[%s3198_s29 + $0x140] sm:$0xff] }
  0x96   : > { %2423 = vmatprep.subr.bf16.mxu1 %v2790_v12  ;;  %v2469_v22 = vpack.c.bf16 %v926_v19, %v925_v18  ;;  %v912_v24 = vld [vmem:[%s3198_s29 + $0x148] sm:$0xff]  ;;  %v927_v25 = vld [vmem:[%s3198_s29 + $0x1c0] sm:$0xff]  ;;  %v913_v29 = vld [vmem:[%s3198_s29 + $0x150] sm:$0xff] }
  0x97   : > { %v928_v26 = vld [vmem:[%s3198_s29 + $0x1c8] sm:$0xff]  ;;  %v2448_v27 = vpack.c.bf16 %v912_v24, %v911_v23  ;;  %v914_v30 = vld [vmem:[%s3198_s29 + $0x158] sm:$0xff]  ;;  %v929_v31 = vld [vmem:[%s3198_s29 + $0x1d0] sm:$0xff] }
  0x98   : > { %2401 = vmatpush3.bf16.msra.mxu0 %v2400_v39  ;;  %v2472_v28 = vpack.c.bf16 %v928_v26, %v927_v25  ;;  %v930_v32 = vld [vmem:[%s3198_s29 + $0x1d8] sm:$0xff]  ;;  %v2451_v33 = vpack.c.bf16 %v914_v30, %v913_v29  ;;  %v915_v35 = vld [vmem:[%s3198_s29 + $0x160] sm:$0xff]  ;;  %v916_v36 = vld [vmem:[%s3198_s29 + $0x168] sm:$0xff] }
  0x99   : > { %2425 = vmatpush3.bf16.msra.mxu1 %v2424_v40  ;;  %2402 = vmatprep.subr.bf16.mxu0 %v2790_v12  ;;  %v2475_v34 = vpack.c.bf16 %v930_v32, %v929_v31  ;;  %v931_v37 = vld [vmem:[%s3198_s29 + $0x1e0] sm:$0xff]  ;;  %v932_v38 = vld [vmem:[%s3198_s29 + $0x1e8] sm:$0xff]  ;;  %v2454_v39 = vpack.c.bf16 %v916_v36, %v915_v35  ;;  %v917_v41 = vld [vmem:[%s3198_s29 + $0x170] sm:$0xff] }
  0x9a   : > { %2426 = vmatprep.subr.bf16.mxu1 %v2790_v12  ;;  %v2478_v40 = vpack.c.bf16 %v932_v38, %v931_v37  ;;  %v918_v42 = vld [vmem:[%s3198_s29 + $0x178] sm:$0xff]  ;;  %v933_v43 = vld [vmem:[%s3198_s29 + $0x1f0] sm:$0xff]  ;;  %v935_v47 = vld [vmem:[%s3198_s29 + $0x200] sm:$0xff] }
  0x9b   : > { %v934_v44 = vld [vmem:[%s3198_s29 + $0x1f8] sm:$0xff]  ;;  %v936_v48 = vld [vmem:[%s3198_s29 + $0x208] sm:$0xff]  ;;  %v951_v49 = vld [vmem:[%s3198_s29 + $0x280] sm:$0xff] }
  0x9c   : > { %2404 = vmatpush3.bf16.msra.mxu0 %v2403_v45  ;;  %v2457_v45 = vpack.c.bf16 %v918_v42, %v917_v41  ;;  %v952_v50 = vld [vmem:[%s3198_s29 + $0x288] sm:$0xff]  ;;  %v937_v55 = vld [vmem:[%s3198_s29 + $0x210] sm:$0xff]  ;;  %v938_v56 = vld [vmem:[%s3198_s29 + $0x218] sm:$0xff] }
  0x9d   : > { %2428 = vmatpush3.bf16.msra.mxu1 %v2427_v46  ;;  %2405 = vmatprep.subr.bf16.mxu0 %v2790_v12  ;;  %v2481_v46 = vpack.c.bf16 %v934_v44, %v933_v43  ;;  %v866_v53 = vld [vmem:[%s3200_s0 + $0x3] sm:$0x1]  ;;  %v2508_v54 = vpack.c.bf16 %v952_v50, %v951_v49  ;;  %v2487_v59 = vpack.c.bf16 %v938_v56, %v937_v55  ;;  %v941_v3 = vld [vmem:[%s3198_s29 + $0x230] sm:$0xff]  ;;  %v942_v4 = vld [vmem:[%s3198_s29 + $0x238] sm:$0xff] }
  0x9e   : > { %2429 = vmatprep.subr.bf16.mxu1 %v2790_v12  ;;  %v939_v61 = vld [vmem:[%s3198_s29 + $0x220] sm:$0xff]  ;;  %v940_v62 = vld [vmem:[%s3198_s29 + $0x228] sm:$0xff]  ;;  %v957_v5 = vld [vmem:[%s3198_s29 + $0x2b0] sm:$0xff] }
  0x9f   : > { %v958_v6 = vld [vmem:[%s3198_s29 + $0x2b8] sm:$0xff]  ;;  %v943_v9 = vld [vmem:[%s3198_s29 + $0x240] sm:$0xff]  ;;  %v944_v10 = vld [vmem:[%s3198_s29 + $0x248] sm:$0xff] }
  0xa0   : > { %2407 = vmatpush3.bf16.msra.mxu0 %v2406_v51  ;;  %v865_v51 = vld [vmem:[%s3200_s0 + $0x2] sm:$0x1]  ;;  %v945_v16 = vld [vmem:[%s3198_s29 + $0x250] sm:$0xff]  ;;  %v946_v17 = vld [vmem:[%s3198_s29 + $0x258] sm:$0xff] }
  0xa1   : > { %2431 = vmatpush3.bf16.msra.mxu1 %v2430_v52  ;;  %2408 = vmatprep.subr.bf16.mxu0 %v2790_v12  ;;  %v2484_v52 = vpack.c.bf16 %v936_v48, %v935_v47  ;;  %v959_v11 = vld [vmem:[%s3198_s29 + $0x2c0] sm:$0xff]  ;;  %v960_v13 = vld [vmem:[%s3198_s29 + $0x2c8] sm:$0xff]  ;;  %v961_v18 = vld [vmem:[%s3198_s29 + $0x2d0] sm:$0xff] }
  0xa2   : > { %2432 = vmatprep.subr.bf16.mxu1 %v2790_v12  ;;  %v962_v19 = vld [vmem:[%s3198_s29 + $0x2d8] sm:$0xff]  ;;  %v947_v23 = vld [vmem:[%s3198_s29 + $0x260] sm:$0xff]  ;;  %v948_v24 = vld [vmem:[%s3198_s29 + $0x268] sm:$0xff] }
  0xa3   : > { %v963_v25 = vld [vmem:[%s3198_s29 + $0x2e0] sm:$0xff]  ;;  %v964_v26 = vld [vmem:[%s3198_s29 + $0x2e8] sm:$0xff]  ;;  %v949_v29 = vld [vmem:[%s3198_s29 + $0x270] sm:$0xff] }
  0xa4   : > { %2410 = vmatpush3.bf16.msra.mxu0 %v2409_v57  ;;  %v953_v57 = vld [vmem:[%s3198_s29 + $0x290] sm:$0xff]  ;;  %v950_v30 = vld [vmem:[%s3198_s29 + $0x278] sm:$0xff]  ;;  %v967_v35 = vld [vmem:[%s3198_s29 + $0x300] sm:$0xff] }
  0xa5   : > { %2434 = vmatpush3.bf16.msra.mxu1 %v2433_v58  ;;  %2435 = vmatprep.subr.bf16.mxu0 %v2790_v12  ;;  %v954_v58 = vld [vmem:[%s3198_s29 + $0x298] sm:$0xff]  ;;  %v965_v31 = vld [vmem:[%s3198_s29 + $0x2f0] sm:$0xff]  ;;  %v968_v36 = vld [vmem:[%s3198_s29 + $0x308] sm:$0xff] }
  0xa6   : > { %2459 = vmatprep.subr.bf16.mxu1 %v2790_v12  ;;  %v2511_v60 = vpack.c.bf16 %v954_v58, %v953_v57  ;;  %v966_v32 = vld [vmem:[%s3198_s29 + $0x2f8] sm:$0xff]  ;;  %v983_v37 = vld [vmem:[%s3198_s29 + $0x380] sm:$0xff]  ;;  %v984_v38 = vld [vmem:[%s3198_s29 + $0x388] sm:$0xff] }
  0xa7   : > { %2140 = vmatmul.mubr.f32.vlgmr.msra.gmra.mrb[0].mxu0 %v863_v63  ;;  %v955_v63 = vld [vmem:[%s3198_s29 + $0x2a0] sm:$0xff]  ;;  %v2556_v42 = vpack.c.bf16 %v984_v38, %v983_v37  ;;  %v969_v43 = vld [vmem:[%s3198_s29 + $0x310] sm:$0xff]  ;;  %v970_v44 = vld [vmem:[%s3198_s29 + $0x318] sm:$0xff] }
  0xa8   : > { %2175 = vmatmul.mubr.f32.vlgmr.msra.gmra.mrb[0].mxu1 %v864_v1  ;;  %2437 = vmatpush3.bf16.msra.mxu0 %v2436_v0  ;;  %v956_v0 = vld [vmem:[%s3198_s29 + $0x2a8] sm:$0xff]  ;;  %v2490_v1 = vpack.c.bf16 %v940_v62, %v939_v61  ;;  %v2535_v47 = vpack.c.bf16 %v970_v44, %v969_v43  ;;  %v971_v49 = vld [vmem:[%s3198_s29 + $0x320] sm:$0xff]  ;;  %v973_v55 = vld [vmem:[%s3198_s29 + $0x330] sm:$0xff] }
  0xa9   : > { %2461 = vmatpush3.bf16.msra.mxu1 %v2460_v2  ;;  %2438 = vmatprep.subr.bf16.mxu0 %v2790_v12  ;;  %v2514_v2 = vpack.c.bf16 %v956_v0, %v955_v63  ;;  %v868_v41 = vld [vmem:[%s3200_s0 + $0x5] sm:$0x1]  ;;  %v974_v56 = vld [vmem:[%s3198_s29 + $0x338] sm:$0xff]  ;;  %v989_v57 = vld [vmem:[%s3198_s29 + $0x3b0] sm:$0xff] }
  0xaa   : > { %2462 = vmatprep.subr.bf16.mxu1 %v2790_v12  ;;  %2209 = vmatprep.mubr.msk.f32.mxu0 %vm2791_vm1, %v2792_v20  ;;  %v972_v50 = vld [vmem:[%s3198_s29 + $0x328] sm:$0xff]  ;;  %v990_v58 = vld [vmem:[%s3198_s29 + $0x3b8] sm:$0xff]  ;;  %v991_v62 = vld [vmem:[%s3198_s29 + $0x3c0] sm:$0xff] }
  0xab   : > { %2244 = vmatprep.mubr.msk.f32.mxu1 %vm2791_vm1, %v2792_v20  ;;  %v976_v61 = vld [vmem:[%s3198_s29 + $0x348] sm:$0xff] }
  0xac   : > { %2440 = vmatpush3.bf16.msra.mxu0 %v2439_v7  ;;  %v2493_v7 = vpack.c.bf16 %v942_v4, %v941_v3  ;;  %v992_v63 = vld [vmem:[%s3198_s29 + $0x3c8] sm:$0xff]  ;;  %v978_v3 = vld [vmem:[%s3198_s29 + $0x358] sm:$0xff]  ;;  %v993_v4 = vld [vmem:[%s3198_s29 + $0x3d0] sm:$0xff] }
  0xad   : > { %2464 = vmatpush3.bf16.msra.mxu1 %v2463_v8  ;;  %2441 = vmatprep.subr.bf16.mxu0 %v2790_v12  ;;  %v2517_v8 = vpack.c.bf16 %v958_v6, %v957_v5  ;;  %v994_v5 = vld [vmem:[%s3198_s29 + $0x3d8] sm:$0xff] }
  0xae   : > { %2465 = vmatprep.subr.bf16.mxu1 %v2790_v12 }
  0xb0   : > { %2443 = vmatpush3.bf16.msra.mxu0 %v2442_v14  ;;  %v2496_v14 = vpack.c.bf16 %v944_v10, %v943_v9  ;;  %v980_v9 = vld [vmem:[%s3198_s29 + $0x368] sm:$0xff]  ;;  %v995_v10 = vld [vmem:[%s3198_s29 + $0x3e0] sm:$0xff] }
  0xb1   : > { %2467 = vmatpush3.bf16.msra.mxu1 %v2466_v15  ;;  %2444 = vmatprep.subr.bf16.mxu0 %v2790_v12  ;;  %v2520_v15 = vpack.c.bf16 %v960_v13, %v959_v11  ;;  %v996_v11 = vld [vmem:[%s3198_s29 + $0x3e8] sm:$0xff] }
  0xb2   : > { %2468 = vmatprep.subr.bf16.mxu1 %v2790_v12 }
  0xb4   : > { %2446 = vmatpush3.bf16.msra.mxu0 %v2445_v21  ;;  %v2499_v21 = vpack.c.bf16 %v946_v17, %v945_v16  ;;  %v982_v16 = vld [vmem:[%s3198_s29 + $0x378] sm:$0xff]  ;;  %v997_v17 = vld [vmem:[%s3198_s29 + $0x3f0] sm:$0xff] }
  0xb5   : > { %2470 = vmatpush3.bf16.msra.mxu1 %v2469_v22  ;;  %2447 = vmatprep.subr.bf16.mxu0 %v2790_v12  ;;  %v2523_v22 = vpack.c.bf16 %v962_v19, %v961_v18  ;;  %v998_v18 = vld [vmem:[%s3198_s29 + $0x3f8] sm:$0xff] }
  0xb6   : > { %2471 = vmatprep.subr.bf16.mxu1 %v2790_v12 }
  0xb8   : > { %2449 = vmatpush3.bf16.msra.mxu0 %v2448_v27  ;;  %v2502_v27 = vpack.c.bf16 %v948_v24, %v947_v23  ;;  %v870_v23 = vld [vmem:[%s3200_s0 + $0x7] sm:$0x1]  ;;  %v855_v24 = vld [vmem:[#allocation2] sm:$0x1] }
  0xb9   : > { %2473 = vmatpush3.bf16.msra.mxu1 %v2472_v28  ;;  %2450 = vmatprep.subr.bf16.mxu0 %v2790_v12  ;;  %v2526_v28 = vpack.c.bf16 %v964_v26, %v963_v25  ;;  %v856_v25 = vld [vmem:[#allocation2 + $0x1] sm:$0x1] }
  0xba   : > { %2474 = vmatprep.subr.bf16.mxu1 %v2790_v12 }
  0xbc   : > { %2452 = vmatpush3.bf16.msra.mxu0 %v2451_v33  ;;  %v2505_v33 = vpack.c.bf16 %v950_v30, %v949_v29 }
  0xbd   : > { %2476 = vmatpush3.bf16.msra.mxu1 %v2475_v34  ;;  %2453 = vmatprep.subr.bf16.mxu0 %v2790_v12  ;;  %v2529_v34 = vpack.c.bf16 %v966_v32, %v965_v31  ;;  %v858_v32 = vld [vmem:[#allocation2 + $0x3] sm:$0x1] }
  0xbe   : > { %2477 = vmatprep.subr.bf16.mxu1 %v2790_v12 }
  0xc0   : > { %2455 = vmatpush3.bf16.msra.mxu0 %v2454_v39  ;;  %v867_v39 = vld [vmem:[%s3200_s0 + $0x4] sm:$0x1] }
  0xc1   : > { %2479 = vmatpush3.bf16.msra.mxu1 %v2478_v40  ;;  %2456 = vmatprep.subr.bf16.mxu0 %v2790_v12  ;;  %v2532_v40 = vpack.c.bf16 %v968_v36, %v967_v35 }
  0xc2   : > { %2480 = vmatprep.subr.bf16.mxu1 %v2790_v12 }
  0xc4   : > { %2458 = vmatpush3.bf16.msra.mxu0 %v2457_v45  ;;  %v985_v45 = vld [vmem:[%s3198_s29 + $0x390] sm:$0xff] }
  0xc5   : > { %2482 = vmatpush3.bf16.msra.mxu1 %v2481_v46  ;;  %2483 = vmatprep.subr.bf16.mxu0 %v2790_v12  ;;  %v986_v46 = vld [vmem:[%s3198_s29 + $0x398] sm:$0xff] }
  0xc6   : > { %2507 = vmatprep.subr.bf16.mxu1 %v2790_v12  ;;  %v2559_v48 = vpack.c.bf16 %v986_v46, %v985_v45 }
  0xc7   : > { %2210 = vmatmul.mubr.f32.vlgmr.msra.gmra.mrb[2].mxu0 %v865_v51  ;;  %v987_v51 = vld [vmem:[%s3198_s29 + $0x3a0] sm:$0xff] }
  0xc8   : > { %2245 = vmatmul.mubr.f32.vlgmr.msra.gmra.mrb[2].mxu1 %v866_v53  ;;  %2485 = vmatpush3.bf16.msra.mxu0 %v2484_v52  ;;  %v988_v52 = vld [vmem:[%s3198_s29 + $0x3a8] sm:$0xff]  ;;  %v2538_v53 = vpack.c.bf16 %v972_v50, %v971_v49 }
  0xc9   : > { %2509 = vmatpush3.bf16.msra.mxu1 %v2508_v54  ;;  %2486 = vmatprep.subr.bf16.mxu0 %v2790_v12  ;;  %v2562_v54 = vpack.c.bf16 %v988_v52, %v987_v51 }
  0xca   : > { %2510 = vmatprep.subr.bf16.mxu1 %v2790_v12  ;;  %2279 = vmatprep.mubr.msk.f32.mxu0 %vm2791_vm1, %v2792_v20 }
  0xcb   : > { %2314 = vmatprep.mubr.msk.f32.mxu1 %vm2791_vm1, %v2792_v20 }
  0xcc   : > { %2488 = vmatpush3.bf16.msra.mxu0 %v2487_v59  ;;  %v2565_v59 = vpack.c.bf16 %v990_v58, %v989_v57  ;;  %v1594_v58 = vlaneseq (!%p1964_p5) }
  0xcd   : > { %2512 = vmatpush3.bf16.msra.mxu1 %v2511_v60  ;;  %2489 = vmatprep.subr.bf16.mxu0 %v2790_v12  ;;  %v975_v60 = vld [vmem:[%s3198_s29 + $0x340] sm:$0xff] }
  0xce   : > { %2513 = vmatprep.subr.bf16.mxu1 %v2790_v12  ;;  %v2544_v0 = vpack.c.bf16 %v976_v61, %v975_v60  ;;  %v3430_v60 = vshrl.u32 (!%p1964_p5), %v1594_v58, 7 }
  0xd0   : > { %2491 = vmatpush3.bf16.msra.mxu0 %v2490_v1  ;;  %v2568_v1 = vpack.c.bf16 %v992_v63, %v991_v62  ;;  %v1596_v62 = vsub.s32 (!%p1964_p5), 0, %v3430_v60  ;;  %v1600_v63 = vsub.s32 (!%p1964_p5), 1, %v3430_v60 }
  0xd1   : > { %2515 = vmatpush3.bf16.msra.mxu1 %v2514_v2  ;;  %2492 = vmatprep.subr.bf16.mxu0 %v2790_v12  ;;  %v977_v2 = vld [vmem:[%s3198_s29 + $0x350] sm:$0xff] }
  0xd2   : > { %2516 = vmatprep.subr.bf16.mxu1 %v2790_v12  ;;  %v2547_v6 = vpack.c.bf16 %v978_v3, %v977_v2  ;;  %v1612_v2 = vsub.s32 (!%p1964_p5), 4, %v3430_v60  ;;  %v1616_v3 = vsub.s32 (!%p1964_p5), 5, %v3430_v60 }
  0xd4   : > { %2494 = vmatpush3.bf16.msra.mxu0 %v2493_v7  ;;  %v2571_v7 = vpack.c.bf16 %v994_v5, %v993_v4  ;;  %v1620_v4 = vsub.s32 (!%p1964_p5), 6, %v3430_v60  ;;  %v1624_v5 = vsub.s32 (!%p1964_p5), 7, %v3430_v60 }
  0xd5   : > { %2518 = vmatpush3.bf16.msra.mxu1 %v2517_v8  ;;  %2495 = vmatprep.subr.bf16.mxu0 %v2790_v12  ;;  %v979_v8 = vld [vmem:[%s3198_s29 + $0x360] sm:$0xff] }
  0xd6   : > { %2519 = vmatprep.subr.bf16.mxu1 %v2790_v12  ;;  %v2550_v13 = vpack.c.bf16 %v980_v9, %v979_v8 }
  0xd8   : > { %2497 = vmatpush3.bf16.msra.mxu0 %v2496_v14  ;;  %v2574_v14 = vpack.c.bf16 %v996_v11, %v995_v10 }
  0xd9   : > { %2521 = vmatpush3.bf16.msra.mxu1 %v2520_v15  ;;  %2498 = vmatprep.subr.bf16.mxu0 %v2790_v12  ;;  %v981_v15 = vld [vmem:[%s3198_s29 + $0x370] sm:$0xff] }
  0xda   : > { %2522 = vmatprep.subr.bf16.mxu1 %v2790_v12  ;;  %v2553_v19 = vpack.c.bf16 %v982_v16, %v981_v15 }
  0xdc   : > { %2500 = vmatpush3.bf16.msra.mxu0 %v2499_v21  ;;  %v2577_v21 = vpack.c.bf16 %v998_v18, %v997_v17 }
  0xdd   : > { %2524 = vmatpush3.bf16.msra.mxu1 %v2523_v22  ;;  %2501 = vmatprep.subr.bf16.mxu0 %v2790_v12  ;;  %v869_v22 = vld [vmem:[%s3200_s0 + $0x6] sm:$0x1] }
  0xde   : > { %2525 = vmatprep.subr.bf16.mxu1 %v2790_v12 }
  0xe0   : > { %2503 = vmatpush3.bf16.msra.mxu0 %v2502_v27 }
  0xe1   : > { %2527 = vmatpush3.bf16.msra.mxu1 %v2526_v28  ;;  %2504 = vmatprep.subr.bf16.mxu0 %v2790_v12 }
  0xe2   : > { %2528 = vmatprep.subr.bf16.mxu1 %v2790_v12 }
  0xe4   : > { %2506 = vmatpush3.bf16.msra.mxu0 %v2505_v33 }
  0xe5   : > { %2530 = vmatpush3.bf16.msra.mxu1 %v2529_v34  ;;  %2531 = vmatprep.subr.bf16.mxu0 %v2790_v12 }
  0xe6   : > { %2555 = vmatprep.subr.bf16.mxu1 %v2790_v12 }
  0xe7   : > { %2280 = vmatmul.mubr.f32.vlgmr.msra.gmra.mrb[4].mxu0 %v867_v39  ;;  %v859_v39 = vld [vmem:[#allocation2 + $0x4] sm:$0x1] }
  0xe8   : > { %2315 = vmatmul.mubr.f32.vlgmr.msra.gmra.mrb[4].mxu1 %v868_v41  ;;  %2533 = vmatpush3.bf16.msra.mxu0 %v2532_v40  ;;  %v860_v40 = vld [vmem:[#allocation2 + $0x5] sm:$0x1] }
  0xe9   : > { %2557 = vmatpush3.bf16.msra.mxu1 %v2556_v42  ;;  %2534 = vmatprep.subr.bf16.mxu0 %v2790_v12 }
  0xea   : > { %2558 = vmatprep.subr.bf16.mxu1 %v2790_v12  ;;  %2349 = vmatprep.mubr.msk.f32.mxu0 %vm2791_vm1, %v2792_v20 }
  0xeb   : > { %2384 = vmatprep.mubr.msk.f32.mxu1 %vm2791_vm1, %v2792_v20  ;;  %v2541_v20 = vpack.c.bf16 %v974_v56, %v973_v55  ;;  %v1588_v55 = vld [vmem:[%s3196_s4] sm:$0xff] (!%p1964_p5)  ;;  %v2793_v56 = vmov (!%p1964_p5), 0  }
  0xec   : > { %2536 = vmatpush3.bf16.msra.mxu0 %v2535_v47  ;;  %v861_v47 = vld [vmem:[#allocation2 + $0x6] sm:$0x1]  ;;  %2672 = vset.pattern.permute.xlu0 (!%p1964_p5), %v2793_v56  ;;  %2673 = vrcp.f32 (!%p1964_p5), %v1588_v55 }
  0xed   : > { %2560 = vmatpush3.bf16.msra.mxu1 %v2559_v48  ;;  %2537 = vmatprep.subr.bf16.mxu0 %v2790_v12  ;;  %v862_v48 = vld [vmem:[#allocation2 + $0x7] sm:$0x1] }
  0xee   : > { %2561 = vmatprep.subr.bf16.mxu1 %v2790_v12 }
  0xf0   : > { %2539 = vmatpush3.bf16.msra.mxu0 %v2538_v53 }
  0xf1   : > { %2563 = vmatpush3.bf16.msra.mxu1 %v2562_v54  ;;  %2540 = vmatprep.subr.bf16.mxu0 %v2790_v12 }
  0xf2   : > { %2564 = vmatprep.subr.bf16.mxu1 %v2790_v12 }
  0xf4   : > { %2542 = vmatpush3.bf16.msra.mxu0 %v2541_v20  ;;  %v2794_v20 = vmov (!%p1964_p5), 1966171168  }
  0xf5   : > { %2566 = vmatpush3.bf16.msra.mxu1 %v2565_v59  ;;  %2543 = vmatprep.subr.bf16.mxu0 %v2790_v12  ;;  %v1663_v59 = vunpack.c.l.s4 (!%p1964_p5), %v2794_v20 }
  0xf6   : > { %2567 = vmatprep.subr.bf16.mxu1 %v2790_v12  ;;  %v2674_v57 = vpop.eup (!%p1964_p5), %2673 }
  0xf7   : > { %1592 = vperm.xlu0 (!%p1964_p5), %2672, %v2674_v57   ;;  %v1664_v61 = vunpack.c.0.s8 (!%p1964_p5), %v1663_v59 }
  0xf8   : > { %2545 = vmatpush3.bf16.msra.mxu0 %v2544_v0  ;;  %v1604_v0 = vsub.s32 (!%p1964_p5), 2, %v3430_v60 }
  0xf9   : > { %2569 = vmatpush3.bf16.msra.mxu1 %v2568_v1  ;;  %2546 = vmatprep.subr.bf16.mxu0 %v2790_v12  ;;  %v1608_v1 = vsub.s32 (!%p1964_p5), 3, %v3430_v60 }
  0xfa   : > { %2570 = vmatprep.subr.bf16.mxu1 %v2790_v12 }
  0xfc   : > { %2548 = vmatpush3.bf16.msra.mxu0 %v2547_v6 }
  0xfd   : > { %2572 = vmatpush3.bf16.msra.mxu1 %v2571_v7  ;;  %2549 = vmatprep.subr.bf16.mxu0 %v2790_v12 }
  0xfe   : > { %2573 = vmatprep.subr.bf16.mxu1 %v2790_v12 }
 0x100   : > { %2551 = vmatpush3.bf16.msra.mxu0 %v2550_v13  ;;  %v3441_v13 = vsub.s32 (!%p1964_p5), %v1664_v61, %v3430_v60 }
 0x101   : > { %2575 = vmatpush3.bf16.msra.mxu1 %v2574_v14  ;;  %2552 = vmatprep.subr.bf16.mxu0 %v2790_v12 }
 0x102   : > { %2576 = vmatprep.subr.bf16.mxu1 %v2790_v12  ;;  %v857_v12 = vld [vmem:[#allocation2 + $0x2] sm:$0x1] }
 0x104   : > { %2554 = vmatpush3.bf16.msra.mxu0 %v2553_v19 }
 0x105   : > { %2578 = vmatpush3.bf16.msra.mxu1 %v2577_v21 }
 0x107   : > { %2350 = vmatmul.mubr.f32.vlgmr.msra.gmra.mrb[6].mxu0 %v869_v22 }
 0x108   : > { %2385 = vmatmul.mubr.f32.vlgmr.msra.gmra.mrb[6].mxu1 %v870_v23 }
 0x176   : > { %v1593_v8 = vpop.permute.xlu0 (!%p1964_p5), %1592 }
 0x177   : > { %v1597_v17 = vrot.slane (!%p1964_p5), %v1593_v8, %v1596_v62  ;;  %v1601_v18 = vrot.slane (!%p1964_p5), %v1593_v8, %v1600_v63  ;;  %v1605_v19 = vrot.slane (!%p1964_p5), %v1593_v8, %v1604_v0  ;;  %v1609_v21 = vrot.slane (!%p1964_p5), %v1593_v8, %v1608_v1 }
 0x178   : > { %v1613_v22 = vrot.slane (!%p1964_p5), %v1593_v8, %v1612_v2  ;;  %v1617_v23 = vrot.slane (!%p1964_p5), %v1593_v8, %v1616_v3 }
 0x17a   : > { %v1065_v26 = vpop.f32.mrb[0].mxu0 }
 0x17b   : > { %v1559_v27 = vadd.f32 %v1065_v26, %v855_v24  ;;  %v1135_v28 = vpop.f32.mrb[0].mxu1  ;;  %v2141_v29 = vpop.f32.mrb[1].mxu0  ;;  %v1621_v24 = vrot.slane (!%p1964_p5), %v1593_v8, %v1620_v4 }
 0x17c   : > { %v1560_v30 = vadd.f32 %v1135_v28, %v856_v25  ;;  %v2176_v31 = vpop.f32.mrb[1].mxu1  ;;  %v1625_v25 = vrot.slane (!%p1964_p5), %v1593_v8, %v1624_v5 }
 0x17d   : > { %1568 = vst.msk [vmem:[#allocation2] sm:$0x1] %vm1567_vm2, %v1559_v27 }
 0x17e   : > { %1569 = vst.msk [vmem:[#allocation2 + $0x1] sm:$0x1] %vm1567_vm2, %v1560_v30 }
 0x184   : > { %v1580_v6 = vld [vmem:[#allocation2] sm:$0x1] (!%p1964_p5) }
 0x185   : > { %v1581_v7 = vld [vmem:[#allocation2 + $0x1] sm:$0x1] (!%p1964_p5)  ;;  %v1634_v26 = vmul.f32 (!%p1964_p5), %v1597_v17, %v1580_v6 }
 0x186   : > { %v1635_v27 = vmul.f32 (!%p1964_p5), %v1601_v18, %v1581_v7 }
 0x19a   : > { %v1205_v33 = vpop.f32.mrb[2].mxu0 }
 0x19b   : > { %v1561_v34 = vadd.f32 %v1205_v33, %v857_v12  ;;  %v1275_v35 = vpop.f32.mrb[2].mxu1  ;;  %v2211_v36 = vpop.f32.mrb[3].mxu0  ;;  %v1642_v33 = vmul.f32 (!%p1964_p5), %v1634_v26, %v1634_v26 }
 0x19c   : > { %v1562_v37 = vadd.f32 %v1275_v35, %v858_v32  ;;  %v2246_v38 = vpop.f32.mrb[3].mxu1 }
 0x19d   : > { %1570 = vst.msk [vmem:[#allocation2 + $0x2] sm:$0x1] %vm1567_vm2, %v1561_v34  ;;  %v1643_v34 = vmul.f32 (!%p1964_p5), %v1635_v27, %v1635_v27 }
 0x19e   : > { %1571 = vst.msk [vmem:[#allocation2 + $0x3] sm:$0x1] %vm1567_vm2, %v1562_v37 }
 0x1a4   : > { %v1582_v9 = vld [vmem:[#allocation2 + $0x2] sm:$0x1] (!%p1964_p5) }
 0x1a5   : > { %v1583_v10 = vld [vmem:[#allocation2 + $0x3] sm:$0x1] (!%p1964_p5)  ;;  %v1636_v28 = vmul.f32 (!%p1964_p5), %v1605_v19, %v1582_v9 }
 0x1a6   : > { %v1637_v29 = vmul.f32 (!%p1964_p5), %v1609_v21, %v1583_v10 }
 0x1a7   : > { %v1644_v35 = vmul.f32 (!%p1964_p5), %v1636_v28, %v1636_v28 }
 0x1a8   : > { %v1645_v36 = vmul.f32 (!%p1964_p5), %v1637_v29, %v1637_v29 }
 0x1ba   : > { %v1345_v41 = vpop.f32.mrb[4].mxu0 }
 0x1bb   : > { %v1563_v42 = vadd.f32 %v1345_v41, %v859_v39  ;;  %v1415_v43 = vpop.f32.mrb[4].mxu1  ;;  %v2281_v44 = vpop.f32.mrb[5].mxu0  ;;  %v1658_v41 = vcombine.low (!%p1964_p5), %v1642_v33, %v1643_v34 }
 0x1bc   : > { %v1564_v45 = vadd.f32 %v1415_v43, %v860_v40  ;;  %v2316_v46 = vpop.f32.mrb[5].mxu1 }
 0x1bd   : > { %1572 = vst.msk [vmem:[#allocation2 + $0x4] sm:$0x1] %vm1567_vm2, %v1563_v42  ;;  %v1659_v42 = vcombine.low (!%p1964_p5), %v1644_v35, %v1645_v36 }
 0x1be   : > { %1573 = vst.msk [vmem:[#allocation2 + $0x5] sm:$0x1] %vm1567_vm2, %v1564_v45  ;;  %v1668_v45 = vrot.slane (!%p1964_p5), %v1658_v41, %v3441_v13 }
 0x1bf   : > { %v1675_v46 = vrot.slane (!%p1964_p5), %v1659_v42, %v3441_v13 }
 0x1c4   : > { %v1584_v11 = vld [vmem:[#allocation2 + $0x4] sm:$0x1] (!%p1964_p5) }
 0x1c5   : > { %v1585_v14 = vld [vmem:[#allocation2 + $0x5] sm:$0x1] (!%p1964_p5)  ;;  %v1638_v30 = vmul.f32 (!%p1964_p5), %v1613_v22, %v1584_v11 }
 0x1c6   : > { %v1639_v31 = vmul.f32 (!%p1964_p5), %v1617_v23, %v1585_v14 }
 0x1c7   : > { %v1646_v37 = vmul.f32 (!%p1964_p5), %v1638_v30, %v1638_v30 }
 0x1c8   : > { %v1647_v38 = vmul.f32 (!%p1964_p5), %v1639_v31, %v1639_v31 }
 0x1ca   : > { %v1660_v43 = vcombine.low (!%p1964_p5), %v1646_v37, %v1647_v38 }
 0x1d8   : > { %1579 = sbr.rel (%p1964_p5) target bundleno = 672 (0x2a0), region = 119 }
 0x1da   : > { %v1485_v49 = vpop.f32.mrb[6].mxu0 }
 0x1db   : > { %v1565_v50 = vadd.f32 %v1485_v49, %v861_v47  ;;  %v1555_v51 = vpop.f32.mrb[6].mxu1  ;;  %v2351_v52 = vpop.f32.mrb[7].mxu0  ;;  %v1682_v47 = vrot.slane (!%p1964_p5), %v1660_v43, %v3441_v13  ;;  %v1690_v49 = vcombine.low (!%p1964_p5), %v1668_v45, %v1675_v46 }
 0x1dc   : > { %v1566_v53 = vadd.f32 %v1555_v51, %v862_v48  ;;  %v2386_v54 = vpop.f32.mrb[7].mxu1 }
 0x1dd   : > { %1574 = vst.msk [vmem:[#allocation2 + $0x6] sm:$0x1] %vm1567_vm2, %v1565_v50  ;;  %v1698_v51 = vrot.slane (!%p1964_p5), %v1690_v49, %v3441_v13 }
 0x1de   : > { %1575 = vst.msk [vmem:[#allocation2 + $0x7] sm:$0x1] %vm1567_vm2, %v1566_v53 }
 0x1e4   : > { %v1586_v15 = vld [vmem:[#allocation2 + $0x6] sm:$0x1] }
 0x1e5   : > { %v1587_v16 = vld [vmem:[#allocation2 + $0x7] sm:$0x1]  ;;  %v1640_v12 = vmul.f32 %v1621_v24, %v1586_v15 }
 0x1e6   : > { %v1641_v32 = vmul.f32 %v1625_v25, %v1587_v16 }
 0x1e7   : > { %v1648_v39 = vmul.f32 %v1640_v12, %v1640_v12 }
 0x1e8   : > { %v1649_v40 = vmul.f32 %v1641_v32, %v1641_v32 }
 0x1ea   : > { %v1661_v44 = vcombine.low %v1648_v39, %v1649_v40 }
 0x1ec   : > { %v1689_v48 = vrot.slane %v1661_v44, %v3441_v13 }
 0x1ee   : > { %v1691_v50 = vcombine.low %v1682_v47, %v1689_v48 }
 0x1f0   : > { %v1705_v52 = vrot.slane %v1691_v50, %v3441_v13 }
 0x1f2   : > { %v1706_v53 = vcombine.low %v1698_v51, %v1705_v52 }
 0x1f4   : > { %v1709_v54 = vsel %vm1708_vm3, %v1706_v53, 0.0 }
 0x1f5   : > { %1710 = vadd.xlane.f32.xlu0 %v1709_v54 }
 0x282   : > { %v1711_v55 = vpop.xlane.xlu0 %1710 }
 0x283   : > { %v1712_v56 = vmax.f32 %v1711_v55, 1e-24 }
 0x285   : > { %2675 = vrsqrt.f32 %v1712_v56 }
 0x28f   : > { %v2676_v57 = vpop.eup %2675 }
 0x290   : > { %v1718_v58 = vrot.slane %v2676_v57, %v1596_v62  ;;  %v1722_v20 = vrot.slane %v2676_v57, %v1600_v63  ;;  %v1726_v59 = vrot.slane %v2676_v57, %v1604_v0  ;;  %v1730_v60 = vrot.slane %v2676_v57, %v1608_v1 }
 0x291   : > { %v1734_v61 = vrot.slane %v2676_v57, %v1612_v2  ;;  %v1738_v6 = vrot.slane %v2676_v57, %v1616_v3  ;;  %v1742_v7 = vrot.slane %v2676_v57, %v1620_v4  ;;  %v1746_v8 = vrot.slane %v2676_v57, %v1624_v5 }
 0x292   : > { %v1755_v9 = vmul.f32 %v1718_v58, %v1634_v26  ;;  %v1756_v10 = vmul.f32 %v1722_v20, %v1635_v27  ;;  %v1757_v11 = vmul.f32 %v1726_v59, %v1636_v28  ;;  %v1758_v14 = vmul.f32 %v1730_v60, %v1637_v29 }
 0x293   : > { %v1759_v15 = vmul.f32 %v1734_v61, %v1638_v30  ;;  %v1760_v16 = vmul.f32 %v1738_v6, %v1639_v31  ;;  %v1761_v17 = vmul.f32 %v1742_v7, %v1640_v12  ;;  %v1762_v18 = vmul.f32 %v1746_v8, %v1641_v32 }
 0x294   : > { %v1771_v19 = vcombine.low %v1755_v9, %v1756_v10  ;;  %v1772_v21 = vcombine.low %v1757_v11, %v1758_v14 }
 0x295   : > { %v1773_v22 = vcombine.low %v1759_v15, %v1760_v16  ;;  %v1774_v62 = vcombine.low %v1761_v17, %v1762_v18 }
 0x296   : > { %v1781_v63 = vrot.slane %v1771_v19, %v3441_v13  ;;  %v1788_v0 = vrot.slane %v1772_v21, %v3441_v13 }
 0x297   : > { %v1795_v1 = vrot.slane %v1773_v22, %v3441_v13  ;;  %v1802_v2 = vrot.slane %v1774_v62, %v3441_v13 }
 0x298   : > { %v1803_v3 = vcombine.low %v1781_v63, %v1788_v0 }
 0x299   : > { %v1804_v4 = vcombine.low %v1795_v1, %v1802_v2 }
 0x29a   : > { %v1811_v5 = vrot.slane %v1803_v3, %v3441_v13 }
 0x29b   : > { %v1818_v23 = vrot.slane %v1804_v4, %v3441_v13 }
 0x29d   : > { %v1819_v24 = vcombine.low %v1811_v5, %v1818_v23 }
 0x29f   : > { %1821 = vst.msk [vmem:[%s834_s15] sm:$0xff] %vm1708_vm3, %v1819_v24 }
 0x2a0 PF: > { %s1966_s0 = sshll.u32 %s2775_s18, 7  ;;  %s1836_s9 = sshll.u32 %s834_s15, 4  ;;  %s1837_s9 = int_to_ptr.vmem [resolvable:$true] %s1836_s9 }
 0x2a1   : > { %s3463_s5 = scalar_lea.hbm %s3523_s3, %s1966_s0  ;;  %s1823_s11 = scalar_lea.sflag [#allocation6], %s832_s26 }
 0x2a2   : > { %s2677_s22 = scalar_lea.vmem %s1837_s9, 128  ;;  %s2795_s23 = smov [#allocation5]  }
 0x2a3   : > { %p2678_p6 = scmp.ne.s32.totalorder %s1837_s9, %s2677_s22  ;;  %s2681_s27 = sshll.u32 %s2795_s23, 4  ;;  %s2682_s27 = int_to_ptr.vmem [resolvable:$false] %s2681_s27 }
 0x2a4   : > { %s2683_s4 = scalar_lea.vmem %s2682_s27, 256  ;;  %p2684_p10 = scmp.lt.s32.totalorder %s1837_s9, %s2682_s27 }
 0x2a5   : > { %p2679_p8 = pnand %p2678_p6, %p2888_p7  ;;  %p2685_p11 = scmp.lt.s32.totalorder %s2683_s4, %s2677_s22 }
 0x2a7   : > { %p2680_p9 = pneg %p2679_p8  ;;  %p2686_p13 = por %p2685_p11, %p2684_p10 }
 0x2a9   : > { %p2687_p0 = pnand %p2686_p13, %p2680_p9 }
 0x2ab   : > { %2690 = shalt.err (!%p2687_p0)
}
 0x2ac   : > { %s2691_s18 = scalar_lea.hbm %s3463_s5, 128  ;;  %s2695_s29 = scalar_lea.hbm %s3523_s3, 256 }
 0x2ad   : > { %p2692_p1 = scmp.ne.s32.totalorder %s3463_s5, %s2691_s18  ;;  %p2696_p4 = scmp.lt.u32.totalorder %s3463_s5, %s3523_s3 }
 0x2ae   : > { %p2697_p5 = scmp.lt.u32.totalorder %s2695_s29, %s2691_s18  ;;  %p2699_p8 = scmp.lt.u32.totalorder %s2691_s18, %s3463_s5 }
 0x2af   : > { %p2693_p2 = pnand %p2692_p1, %p2888_p7 }
 0x2b0   : > { %p2698_p6 = por %p2697_p5, %p2696_p4 }
 0x2b1   : > { %p2694_p3 = pneg %p2693_p2 }
 0x2b2   : > { %p2700_p9 = por %p2699_p8, %p2698_p6 }
 0x2b4   : > { %p2701_p10 = pnand %p2700_p9, %p2694_p3 }
 0x2b6   : > { %2704 = shalt.err (!%p2701_p10)
}
 0x2b7   : > { %2579 = dma.vmem_to_hbm [thread:$0]  (%p2888_p7), %s1837_s9, 128, %s3463_s5, %s1823_s11  }
 0x2b8 PF: > { %p2585_p11 = scmp.ge.s32.totalorder %s2787_s21, 2  ;;  %s1848_s17 = sand.u32 1, %s2751_s12  }
 0x2b9   : > { %s1849_s28 = scalar_lea.sflag [#allocation6], %s1848_s17 }
 0x2ba   : > { %p2582_p13 = pnand %p2585_p11, %p2896_p12 }
 0x2bc   : > { %2746 = dma.done.wait (!%p2582_p13), %s1849_s28, 128  }
 0x2bd   : > { %2748 = vsyncadd (!%p2582_p13), %s1849_s28, 4294967168  ;;  %s16_s21 = sadd.s32 1, %s2787_s21   ;;  %s3529_s12 = smov %s2755_s13 }
 0x2be   : > { %p13_p0 = scmp.ge.s32.totalorder %s16_s21, 6   ;;  %s3530_s13 = smov %s2759_s14 }
 0x2bf   : > { %s3531_s14 = smov %s2901_s7  ;;  %s3532_s15 = smov %s2767_s16 }
 0x2c0   : > { %s3533_s16 = smov %s2904_s8  ;;  %s3534_s17 = smov %s2779_s19 }
 0x2c1   : > { %s3535_s18 = smov %s2783_s20  ;;  %s3536_s19 = smov %s3539_s24 }
 0x2c2   : > { %s3537_s20 = smov %s3543_s25  ;;  %15 = sbr.rel (!%p13_p0) target bundleno = 8 (0x8), region = 170 }
 0x2c9   :  { %1854 = vsyncpa [#allocation6], 1 }
 0x2ca   :  { %1856 = vsyncpa [#allocation6 + $0x1], 1 }

</bundles_post_ra>
